<compile_context>
chip_gen: v7x
topology: tpu7x:2x2x1
jax: 0.10.0
libtpu: 0.0.40
codegen_flags: <defaults>
</compile_context>

<pallas_src>
import functools

import jax
import jax.numpy as jnp
from jax.experimental import pallas as pl
from jax.experimental.pallas import tpu as pltpu


# --------------------------------- kernel -----------------------------------

def _attention_kernel(xq_ref, xkv_ref, wq_ref, wk_ref, wv_ref, wp_ref,
                      o_ref, acc_ref, *, scale):
    # xq_ref : (1, block_q, C)   query rows for this tile
    # xkv_ref: (1, N, C)         all rows of this batch element (keys/values)
    # wq/wk/wv_ref: (1, C, D)    per-head projection weights (D = head_dim)
    # wp_ref : (1, D, C)         per-head slice of the output projection
    # o_ref  : (1, block_q, C)   output tile (lane-dense last dim = C)
    # acc_ref: (block_q, C) f32  output-projection accumulator over heads
    h = pl.program_id(2)

    xq = xq_ref[0]
    xkv = xkv_ref[0]
    wq = wq_ref[0]
    wk = wk_ref[0]
    wv = wv_ref[0]
    wp = wp_ref[0]

    # Per-head projections on the MXU: native-dtype operands, f32 accumulate.
    q = jnp.dot(xq, wq, preferred_element_type=jnp.float32) * scale   # (bq, D)
    k = jnp.dot(xkv, wk, preferred_element_type=jnp.float32)          # (N,  D)
    v = jnp.dot(xkv, wv, preferred_element_type=jnp.float32)          # (N,  D)

    # Scores q @ k^T without materializing a transpose (contract on D).
    s = jax.lax.dot_general(q, k, (((1,), (1,)), ((), ())),
                            preferred_element_type=jnp.float32)       # (bq, N)

    # Numerically-stable softmax; normalize after the (small) attn @ v matmul.
    m = jnp.max(s, axis=-1, keepdims=True)
    p = jnp.exp(s - m)                                                 # (bq, N)
    l = jnp.sum(p, axis=-1, keepdims=True)                             # (bq, 1)
    ctx = jnp.dot(p, v, preferred_element_type=jnp.float32)            # (bq, D)
    ctx = ctx / l

    @pl.when(h == 0)
    def _init():
        acc_ref[...] = jnp.zeros_like(acc_ref)

    # Output projection, accumulated across heads.
    acc_ref[...] += jnp.dot(ctx.astype(wp.dtype), wp,
                            preferred_element_type=jnp.float32)

    @pl.when(h == pl.num_programs(2) - 1)
    def _finalize():
        o_ref[0] = acc_ref[...].astype(o_ref.dtype)


# -------------------------------- wrapper -----------------------------------

@functools.partial(jax.jit, static_argnames=("num_heads", "head_dim", "block_q"))
def attention_forward(x, w_qkv, w_proj, *, num_heads, head_dim, block_q=None):
    """x: (B, H, W, C); w_qkv: (C, 3*A) = qkv.weight.T; w_proj: (A, C) = proj.weight.T."""
    B, H, W, C = x.shape
    N = H * W
    A = num_heads * head_dim
    assert w_qkv.shape == (C, 3 * A)
    assert w_proj.shape == (A, C)
    scale = float(head_dim) ** -0.5

    x_tok = x.reshape(B, N, C)

    # Split the fused qkv weight into per-head Q/K/V matrices: (num_heads, C, D).
    w3 = jnp.transpose(w_qkv.reshape(C, 3, num_heads, head_dim), (1, 2, 0, 3))
    wq, wk, wv = w3[0], w3[1], w3[2]
    # Per-head slices of the output projection: (num_heads, D, C).
    wp = w_proj.reshape(num_heads, head_dim, C)

    if block_q is None:
        block_q = min(N, 512)
    if N % block_q != 0:
        block_q = N          # fall back to a single query tile
    nq = N // block_q

    grid = (B, nq, num_heads)

    flops = B * num_heads * (8 * N * C * head_dim + 4 * N * N * head_dim)
    bytes_accessed = int(2 * x_tok.size * x_tok.dtype.itemsize
                         + (w_qkv.size + w_proj.size) * w_qkv.dtype.itemsize)
    cost = pl.CostEstimate(flops=int(flops),
                           transcendentals=int(B * num_heads * N * N),
                           bytes_accessed=bytes_accessed)

    kernel = functools.partial(_attention_kernel, scale=scale)

    out = pl.pallas_call(
        kernel,
        out_shape=jax.ShapeDtypeStruct((B, N, C), x.dtype),
        grid_spec=pltpu.PrefetchScalarGridSpec(
            num_scalar_prefetch=0,
            grid=grid,
            in_specs=[
                pl.BlockSpec((1, block_q, C), lambda b, qi, h: (b, qi, 0)),   # x (queries)
                pl.BlockSpec((1, N, C), lambda b, qi, h: (b, 0, 0)),          # x (keys/values)
                pl.BlockSpec((1, C, head_dim), lambda b, qi, h: (h, 0, 0)),   # Wq[h]
                pl.BlockSpec((1, C, head_dim), lambda b, qi, h: (h, 0, 0)),   # Wk[h]
                pl.BlockSpec((1, C, head_dim), lambda b, qi, h: (h, 0, 0)),   # Wv[h]
                pl.BlockSpec((1, head_dim, C), lambda b, qi, h: (h, 0, 0)),   # Wproj[h]
            ],
            out_specs=pl.BlockSpec((1, block_q, C), lambda b, qi, h: (b, qi, 0)),
            scratch_shapes=[pltpu.VMEM((block_q, C), jnp.float32)],
        ),
        compiler_params=pltpu.CompilerParams(
            dimension_semantics=("parallel", "parallel", "arbitrary"),
        ),
        cost_estimate=cost,
    )(x_tok, x_tok, wq, wk, wv, wp)

    return out.reshape(B, H, W, C)


# ------------------------------ param setup ---------------------------------

def init_attention_params(key, dim, head_dim=32, num_heads=None, dtype=jnp.float32):
    num_heads = num_heads if num_heads else dim // head_dim
    if num_heads == 0:
        num_heads = 1
    A = num_heads * head_dim
    k1, k2 = jax.random.split(key)
    # nn.Linear default init: U(-1/sqrt(fan_in), 1/sqrt(fan_in)); bias=False.
    b1 = 1.0 / (dim ** 0.5)
    b2 = 1.0 / (A ** 0.5)
    w_qkv = jax.random.uniform(k1, (dim, 3 * A), dtype, -b1, b1)   # qkv.weight.T
    w_proj = jax.random.uniform(k2, (A, dim), dtype, -b2, b2)      # proj.weight.T
    return w_qkv, w_proj, num_heads


def attention_reference(x, w_qkv, w_proj, num_heads, head_dim):
    B, H, W, C = x.shape
    N = H * W
    A = num_heads * head_dim
    scale = head_dim ** -0.5
    qkv = x.reshape(B, N, C) @ w_qkv
    qkv = qkv.reshape(B, N, 3, num_heads, head_dim).transpose(2, 0, 3, 1, 4)
    q, k, v = qkv[0], qkv[1], qkv[2]
    attn = (q @ jnp.swapaxes(k, -1, -2)) * scale
    attn = jax.nn.softmax(attn, axis=-1)
    ctx = (attn @ v).transpose(0, 2, 1, 3).reshape(B, N, A)
    out = ctx @ w_proj
    return out.reshape(B, H, W, C)


# ---------------------------------- main -------------------------------------

if __name__ == "__main__":
    key = jax.random.PRNGKey(0)
    kx, kp = jax.random.split(key)

    # B=2, H=W=16 -> N=256 tokens; dim=64, head_dim=32 -> num_heads=2.
    B, Hs, Ws, dim = 2, 16, 16, 64
    head_dim = 32
    x = jax.random.normal(kx, (B, Hs, Ws, dim), jnp.float32)
    w_qkv, w_proj, num_heads = init_attention_params(kp, dim, head_dim=head_dim)

    # TODO(synk): attn_drop / proj_drop are identities at p=0.0; dropout is not implemented.
    out = attention_forward(x, w_qkv, w_proj, num_heads=num_heads, head_dim=head_dim)
    out = jax.block_until_ready(out)

    ref = attention_reference(x, w_qkv, w_proj, num_heads, head_dim)
    assert out.shape == ref.shape == (B, Hs, Ws, dim)
    err = float(jnp.max(jnp.abs(out - ref)))
    assert jnp.allclose(out, ref, atol=1e-4, rtol=1e-4), err

    print("KERNEL_OK")
</pallas_src>

<mosaic_0001>
module attributes {stable_mosaic.version = 11 : i64} {
  func.func @_attention_kernel(%arg0: i32, %arg1: i32, %arg2: i32, %arg3: memref<1x256x64xf32, #tpu.memory_space<vmem>>, %arg4: memref<1x256x64xf32, #tpu.memory_space<vmem>>, %arg5: memref<1x64x32xf32, #tpu.memory_space<vmem>>, %arg6: memref<1x64x32xf32, #tpu.memory_space<vmem>>, %arg7: memref<1x64x32xf32, #tpu.memory_space<vmem>>, %arg8: memref<1x32x64xf32, #tpu.memory_space<vmem>>, %arg9: memref<1x256x64xf32, #tpu.memory_space<vmem>>, %arg10: memref<256x64xf32, #tpu.memory_space<vmem>>) attributes {dimension_semantics = [#tpu.dimension_semantics<parallel>, #tpu.dimension_semantics<parallel>, #tpu.dimension_semantics<arbitrary>], iteration_bounds = array<i64: 2, 1, 2>, scalar_prefetch = 0 : i64, scratch_operands = 1 : i64, tpu.core_type = #tpu.core_type<tc>, window_params = [{transform_indices = @transform_0, window_bounds = array<i64: 1, 256, 64>}, {transform_indices = @transform_1, window_bounds = array<i64: 1, 256, 64>}, {transform_indices = @transform_2, window_bounds = array<i64: 1, 64, 32>}, {transform_indices = @transform_3, window_bounds = array<i64: 1, 64, 32>}, {transform_indices = @transform_4, window_bounds = array<i64: 1, 64, 32>}, {transform_indices = @transform_5, window_bounds = array<i64: 1, 32, 64>}, {transform_indices = @transform_6, window_bounds = array<i64: 1, 256, 64>}]} {
    %c0 = arith.constant 0 : index
    %c0_0 = arith.constant 0 : index
    %c0_1 = arith.constant 0 : index
    %0 = vector.load %arg3[%c0, %c0_0, %c0_1] : memref<1x256x64xf32, #tpu.memory_space<vmem>>, vector<1x256x64xf32>
    %1 = vector.shape_cast %0 : vector<1x256x64xf32> to vector<256x64xf32>
    %c0_2 = arith.constant 0 : index
    %c0_3 = arith.constant 0 : index
    %c0_4 = arith.constant 0 : index
    %2 = vector.load %arg4[%c0_2, %c0_3, %c0_4] : memref<1x256x64xf32, #tpu.memory_space<vmem>>, vector<1x256x64xf32>
    %3 = vector.shape_cast %2 : vector<1x256x64xf32> to vector<256x64xf32>
    %c0_5 = arith.constant 0 : index
    %c0_6 = arith.constant 0 : index
    %c0_7 = arith.constant 0 : index
    %4 = vector.load %arg5[%c0_5, %c0_6, %c0_7] : memref<1x64x32xf32, #tpu.memory_space<vmem>>, vector<1x64x32xf32>
    %5 = vector.shape_cast %4 : vector<1x64x32xf32> to vector<64x32xf32>
    %c0_8 = arith.constant 0 : index
    %c0_9 = arith.constant 0 : index
    %c0_10 = arith.constant 0 : index
    %6 = vector.load %arg6[%c0_8, %c0_9, %c0_10] : memref<1x64x32xf32, #tpu.memory_space<vmem>>, vector<1x64x32xf32>
    %7 = vector.shape_cast %6 : vector<1x64x32xf32> to vector<64x32xf32>
    %c0_11 = arith.constant 0 : index
    %c0_12 = arith.constant 0 : index
    %c0_13 = arith.constant 0 : index
    %8 = vector.load %arg7[%c0_11, %c0_12, %c0_13] : memref<1x64x32xf32, #tpu.memory_space<vmem>>, vector<1x64x32xf32>
    %9 = vector.shape_cast %8 : vector<1x64x32xf32> to vector<64x32xf32>
    %c0_14 = arith.constant 0 : index
    %c0_15 = arith.constant 0 : index
    %c0_16 = arith.constant 0 : index
    %10 = vector.load %arg8[%c0_14, %c0_15, %c0_16] : memref<1x32x64xf32, #tpu.memory_space<vmem>>, vector<1x32x64xf32>
    %11 = vector.shape_cast %10 : vector<1x32x64xf32> to vector<32x64xf32>
    %cst = arith.constant dense<0.000000e+00> : vector<256x32xf32>
    %12 = tpu.matmul %1, %5, %cst {dimension_numbers = #tpu.dot_dimension_numbers<[1], [0], [0], [1], [0, 0, 1, 1], [], []>} : vector<256x64xf32>, vector<64x32xf32>, vector<256x32xf32> -> vector<256x32xf32>
    %cst_17 = arith.constant 0.176776692 : f32
    %13 = vector.broadcast %cst_17 : f32 to vector<256x32xf32>
    %14 = arith.mulf %12, %13 : vector<256x32xf32>
    %cst_18 = arith.constant dense<0.000000e+00> : vector<256x32xf32>
    %15 = tpu.matmul %3, %7, %cst_18 {dimension_numbers = #tpu.dot_dimension_numbers<[1], [0], [0], [1], [0, 0, 1, 1], [], []>} : vector<256x64xf32>, vector<64x32xf32>, vector<256x32xf32> -> vector<256x32xf32>
    %cst_19 = arith.constant dense<0.000000e+00> : vector<256x32xf32>
    %16 = tpu.matmul %3, %9, %cst_19 {dimension_numbers = #tpu.dot_dimension_numbers<[1], [0], [0], [1], [0, 0, 1, 1], [], []>} : vector<256x64xf32>, vector<64x32xf32>, vector<256x32xf32> -> vector<256x32xf32>
    %cst_20 = arith.constant dense<0.000000e+00> : vector<256x256xf32>
    %17 = tpu.matmul %14, %15, %cst_20 {dimension_numbers = #tpu.dot_dimension_numbers<[1], [1], [0], [0], [0, 0, 1, 0], [], []>} : vector<256x32xf32>, vector<256x32xf32>, vector<256x256xf32> -> vector<256x256xf32>
    %cst_21 = arith.constant dense<0xFF800000> : vector<256xf32>
    %18 = vector.multi_reduction <maximumf>, %17, %cst_21 [1] : vector<256x256xf32> to vector<256xf32>
    %19 = vector.shape_cast %18 : vector<256xf32> to vector<256x1xf32>
    %20 = vector.broadcast %19 : vector<256x1xf32> to vector<256x256xf32>
    %21 = arith.subf %17, %20 : vector<256x256xf32>
    %22 = math.exp %21 : vector<256x256xf32>
    %cst_22 = arith.constant dense<0.000000e+00> : vector<256xf32>
    %23 = vector.multi_reduction <add>, %22, %cst_22 [1] : vector<256x256xf32> to vector<256xf32>
    %24 = vector.shape_cast %23 : vector<256xf32> to vector<256x1xf32>
    %cst_23 = arith.constant dense<0.000000e+00> : vector<256x32xf32>
    %25 = tpu.matmul %22, %16, %cst_23 {dimension_numbers = #tpu.dot_dimension_numbers<[1], [0], [0], [1], [0, 0, 1, 1], [], []>} : vector<256x256xf32>, vector<256x32xf32>, vector<256x32xf32> -> vector<256x32xf32>
    %26 = vector.broadcast %24 : vector<256x1xf32> to vector<256x32xf32>
    %27 = arith.divf %25, %26 : vector<256x32xf32>
    %c0_i32 = arith.constant 0 : i32
    %28 = arith.cmpi eq, %arg2, %c0_i32 : i32
    %29 = arith.extui %28 : i1 to i32
    %c0_i32_24 = arith.constant 0 : i32
    %30 = arith.cmpi ne, %29, %c0_i32_24 : i32
    scf.if %30 {
      %cst_31 = arith.constant 0.000000e+00 : f32
      %38 = vector.broadcast %cst_31 : f32 to vector<256x64xf32>
      %c0_32 = arith.constant 0 : index
      %c0_33 = arith.constant 0 : index
      %39 = vector.load %arg10[%c0_32, %c0_33] : memref<256x64xf32, #tpu.memory_space<vmem>>, vector<256x64xf32>
      tpu.vector_store %arg10[%c0_32, %c0_33], %38 {strides = array<i32>} : memref<256x64xf32, #tpu.memory_space<vmem>>, vector<256x64xf32>,
    } else {
    }
    %c0_25 = arith.constant 0 : index
    %c0_26 = arith.constant 0 : index
    %31 = vector.load %arg10[%c0_25, %c0_26] : memref<256x64xf32, #tpu.memory_space<vmem>>, vector<256x64xf32>
    %cst_27 = arith.constant dense<0.000000e+00> : vector<256x64xf32>
    %32 = tpu.matmul %27, %11, %cst_27 {dimension_numbers = #tpu.dot_dimension_numbers<[1], [0], [0], [1], [0, 0, 1, 1], [], []>} : vector<256x32xf32>, vector<32x64xf32>, vector<256x64xf32> -> vector<256x64xf32>
    %33 = arith.addf %31, %32 : vector<256x64xf32>
    %c0_28 = arith.constant 0 : index
    %c0_29 = arith.constant 0 : index
    %34 = vector.load %arg10[%c0_28, %c0_29] : memref<256x64xf32, #tpu.memory_space<vmem>>, vector<256x64xf32>
    tpu.vector_store %arg10[%c0_28, %c0_29], %33 {strides = array<i32>} : memref<256x64xf32, #tpu.memory_space<vmem>>, vector<256x64xf32>,
    %c1_i32 = arith.constant 1 : i32
    %35 = arith.cmpi eq, %arg2, %c1_i32 : i32
    %36 = arith.extui %35 : i1 to i32
    %c0_i32_30 = arith.constant 0 : i32
    %37 = arith.cmpi ne, %36, %c0_i32_30 : i32
    scf.if %37 {
      %c0_31 = arith.constant 0 : index
      %c0_32 = arith.constant 0 : index
      %38 = vector.load %arg10[%c0_31, %c0_32] : memref<256x64xf32, #tpu.memory_space<vmem>>, vector<256x64xf32>
      %c0_33 = arith.constant 0 : index
      %c0_34 = arith.constant 0 : index
      %c0_35 = arith.constant 0 : index
      %39 = vector.load %arg9[%c0_33, %c0_34, %c0_35] : memref<1x256x64xf32, #tpu.memory_space<vmem>>, vector<1x256x64xf32>
      %40 = vector.shape_cast %39 : vector<1x256x64xf32> to vector<256x64xf32>
      %41 = vector.shape_cast %38 : vector<256x64xf32> to vector<1x256x64xf32>
      tpu.vector_store %arg9[%c0_33, %c0_34, %c0_35], %41 {strides = array<i32>} : memref<1x256x64xf32, #tpu.memory_space<vmem>>, vector<1x256x64xf32>,
    } else {
    }
    return
  }
  func.func @transform_0(%arg0: i32, %arg1: i32, %arg2: i32) -> (i32, i32, i32) {
    %c0_i32 = arith.constant 0 : i32
    %c0_i32_0 = arith.constant 0 : i32
    return %arg0, %arg1, %c0_i32 : i32, i32, i32
  }
  func.func @transform_1(%arg0: i32, %arg1: i32, %arg2: i32) -> (i32, i32, i32) {
    %c0_i32 = arith.constant 0 : i32
    %c0_i32_0 = arith.constant 0 : i32
    %c0_i32_1 = arith.constant 0 : i32
    return %arg0, %c0_i32, %c0_i32_0 : i32, i32, i32
  }
  func.func @transform_2(%arg0: i32, %arg1: i32, %arg2: i32) -> (i32, i32, i32) {
    %c0_i32 = arith.constant 0 : i32
    %c0_i32_0 = arith.constant 0 : i32
    %c0_i32_1 = arith.constant 0 : i32
    return %arg2, %c0_i32, %c0_i32_0 : i32, i32, i32
  }
  func.func @transform_3(%arg0: i32, %arg1: i32, %arg2: i32) -> (i32, i32, i32) {
    %c0_i32 = arith.constant 0 : i32
    %c0_i32_0 = arith.constant 0 : i32
    %c0_i32_1 = arith.constant 0 : i32
    return %arg2, %c0_i32, %c0_i32_0 : i32, i32, i32
  }
  func.func @transform_4(%arg0: i32, %arg1: i32, %arg2: i32) -> (i32, i32, i32) {
    %c0_i32 = arith.constant 0 : i32
    %c0_i32_0 = arith.constant 0 : i32
    %c0_i32_1 = arith.constant 0 : i32
    return %arg2, %c0_i32, %c0_i32_0 : i32, i32, i32
  }
  func.func @transform_5(%arg0: i32, %arg1: i32, %arg2: i32) -> (i32, i32, i32) {
    %c0_i32 = arith.constant 0 : i32
    %c0_i32_0 = arith.constant 0 : i32
    %c0_i32_1 = arith.constant 0 : i32
    return %arg2, %c0_i32, %c0_i32_0 : i32, i32, i32
  }
  func.func @transform_6(%arg0: i32, %arg1: i32, %arg2: i32) -> (i32, i32, i32) {
    %c0_i32 = arith.constant 0 : i32
    %c0_i32_0 = arith.constant 0 : i32
    return %arg0, %arg1, %c0_i32 : i32, i32, i32
  }
}

</mosaic_0001>

<bundles_post_ra>
// kernel: attention_forward.1
= control target key start
LH: loop header
LB: loop body
LE: loop exit
PB: predicated region body
PF: predicated region fallthrough
CT: control target
= control target key end

     0   :  { %11 = vsyncpa [#allocation4], 0  ;;  %s5741_s0 = inlined_call_operand.vmem [shape: f32[2,256,64], index: 0, kind: input, shape index: {}, may-alias: {0,1}]   ;;  %s5742_s1 = inlined_call_operand.vmem [shape: f32[2,256,64], index: 1, kind: input, shape index: {}, may-alias: {0,1}]   ;;  %s5743_s2 = inlined_call_operand.vmem [shape: f32[2,64,32], index: 2, kind: input, shape index: {}]   ;;  %s5744_s3 = inlined_call_operand.vmem [shape: f32[2,64,32], index: 3, kind: input, shape index: {}]   ;;  %s5745_s4 = inlined_call_operand.vmem [shape: f32[2,64,32], index: 4, kind: input, shape index: {}]   ;;  %s5746_s5 = inlined_call_operand.vmem [shape: f32[2,32,64], index: 5, kind: input, shape index: {}]   ;;  %s5747_s6 = inlined_call_operand.hbm [shape: f32[2,256,64], index: 6, kind: output, shape index: {}]  }
   0x1   :  { %13 = vsyncpa [#allocation4 + $0x1], 0  ;;  %s4464_s21 = smov 0   ;;  %s4466_s22 = smov 0  }
   0x2   :  { %s4468_s23 = smov 0   ;;  %s4470_s24 = smov 0  }
   0x3   :  { %s4472_s25 = smov 0   ;;  %s4474_s26 = smov 0  }
   0x4   :  { %s4476_s27 = smov 0   ;;  %s4478_s28 = smov 0  }
   0x5 LB: > { %s3185_s29 = sadd.s32 4294967295, %s4422_s28   ;;  %s3186_s30 = sadd.s32 4294967294, %s4422_s28   ;;  %s4422_s28 = sphi %s4478_s28, %s19_s28   ;;  %s4418_s27 = sphi %s4476_s27, %s5841_s27   ;;  %s4414_s26 = sphi %s4474_s26, %s5840_s26   ;;  %s4410_s25 = sphi %s4472_s25, %s5839_s25   ;;  %s4406_s24 = sphi %s4470_s24, %s5838_s24   ;;  %s4402_s23 = sphi %s4468_s23, %s5837_s23   ;;  %s4398_s22 = sphi %s4466_s22, %s5836_s22   ;;  %s4394_s21 = sphi %s4464_s21, %s5835_s21  }
   0x6   : > { %s31_s7 = sadd.s32 1, %s4414_s26  ;;  %s38_s8 = sadd.s32 1, %s4418_s27 }
   0x7   : > { %p32_p0 = scmp.ge.s32.totalorder %s31_s7, 2  ;;  %p215_p1 = scmp.ne.s32.totalorder %s4402_s23, %s4398_s22 }
   0x8   : > { %p216_p2 = scmp.eq.s32.totalorder %s3185_s29, 3  ;;  %p221_p4 = scmp.ne.s32.totalorder %s4398_s22, %s4394_s21 }
   0x9   : > { %s5843_s7 = smov (%p32_p0, %s31_s7), 0  ;;  %s5845_s8 = smov (!%p32_p0, %s38_s8), %s4418_s27 }
   0xa   : > { %5763 = sst [smem:[#allocation6_spill]] %s5843_s7  ;;  %p4513_p3 = por %p216_p2, %p215_p1 }
   0xb   : > { %p40_p5 = scmp.ge.s32.totalorder %s5845_s8, 2  ;;  %p222_p6 = scmp.eq.s32.totalorder %s3186_s30, 3 }
   0xc   : > { %p3189_p7 = scmp.ge.s32.totalorder %s4422_s28, 1  ;;  %p293_p8 = scmp.lt.s32.totalorder %s4422_s28, 5 }
   0xd   : > { %s5847_s8 = smov (%p40_p5, %s5845_s8), 0  ;;  %p4523_p9 = por %p222_p6, %p221_p4 }
   0xe   : > { %5765 = sst [smem:[#allocation7_spill]] %s5847_s8  ;;  %p294_p10 = pnand %p3189_p7, %p293_p8 }
   0xf   : > { %s200_s11 = ssub.s32 %s4418_s27, %s5847_s8  ;;  %s205_s12 = sadd.s32 1, %s4402_s23 }
  0x10   : > { %p203_p11 = scmp.eq.s32.totalorder %s200_s11, 0  ;;  %297 = sbr.rel (%p294_p10) target bundleno = 1391 (0x56f), region = 44 }
  0x12   : > { %s4531_s13 = scalar_select %p203_p11, %s4402_s23, %s205_s12  }
  0x17   : > { %p367_p12 = scmp.lt.s32.totalorder %s4406_s24, 1  ;;  %p353_p13 = scmp.lt.s32.totalorder %s4410_s25, 1  ;;  %vm480_vm0 = vcmask 523264   ;;  %vm1380_vm1 = vcmask 261120  }
  0x18   : > { %s5768_s8 = sand.u32 1, %s4398_s22   ;;  %vm4884_vm2 = vmpackc.low %vm1380_vm1, %vm1380_vm1  ;;  %p3363_p0 = scmp.ne.s32.totalorder %s4406_s24, 0 }
  0x19   : > { %s368_s15 = scalar_select %p367_p12, %s4406_s24, 1 }
  0x1a   : > { %s4538_s16 = scalar_select %p353_p13, %s4410_s25, 1 }
  0x1b   : > { %s4540_s17 = sshll.u32 %s368_s15, 6  ;;  %s3407_s18 = sshll.u32 %s368_s15, 5 }
  0x1c   : > { %s376_s29 = scalar_lea.vmem %s5744_s3, %s4540_s17  ;;  %s386_s12 = scalar_lea.vmem %s5746_s5, %s3407_s18 }
  0x1d   : > { %v460_v0 = vld [vmem:[%s376_s29] sm:$0xff]  ;;  %v461_v1 = vld [vmem:[%s376_s29 + $0x8] sm:$0xff]  ;;  %s3402_s14 = sshll.u32 %s4538_s16, 8  ;;  %s4554_s7 = sshll.u32 %s5768_s8, 8  ;;  %v4558_v4 = vld [vmem:[%s386_s12 + $0x10] sm:$0xff] }
  0x1e   : > { %v4549_v2 = vld [vmem:[%s386_s12] sm:$0xff]  ;;  %v4556_v3 = vld [vmem:[%s386_s12 + $0x8] sm:$0xff]  ;;  %5770 = vst [vmem:[#allocation10_spill] sm:$0xff] %v4558_v4  ;;  %v4560_v5 = vld [vmem:[%s386_s12 + $0x18] sm:$0xff]  ;;  %v3925_v6 = vpack.c.bf16 %v461_v1, %v460_v0  ;;  %s4567_s18 = scalar_lea.vmem %s5742_s1, %s3402_s14  ;;  %s371_s30 = scalar_lea.vmem %s5743_s2, %s4540_s17 }
  0x1f   : > { %5767 = vst [vmem:[#allocation8_spill] sm:$0xff] %v4549_v2  ;;  %5769 = vst [vmem:[#allocation9_spill] sm:$0xff] %v4556_v3  ;;  %v462_v7 = vld [vmem:[%s376_s29 + $0x10] sm:$0xff]  ;;  %v463_v8 = vld [vmem:[%s376_s29 + $0x18] sm:$0xff]  ;;  %s4583_s15 = scalar_lea.vmem %s5741_s0, %s3402_s14 }
  0x20   : > { %5771 = vst [vmem:[#allocation11_spill] sm:$0xff] %v4560_v5  ;;  %v464_v9 = vld [vmem:[%s376_s29 + $0x20] sm:$0xff]  ;;  %3926 = vmatprep.subr.bf16.mxu1 %v3925_v6  ;;  %v3929_v10 = vpack.c.bf16 %v463_v8, %v462_v7  ;;  %v465_v11 = vld [vmem:[%s376_s29 + $0x28] sm:$0xff]  ;;  %v466_v14 = vld [vmem:[%s376_s29 + $0x30] sm:$0xff] }
  0x21   : > { %3928 = vmatpush3.bf16.msra.mxu1 %v3925_v6  ;;  %v4570_v12 = vld [vmem:[%s4567_s18] sm:$0xff]  ;;  %v3933_v13 = vpack.c.bf16 %v465_v11, %v464_v9  ;;  %v467_v15 = vld [vmem:[%s376_s29 + $0x38] sm:$0xff]  ;;  %v453_v18 = vld [vmem:[%s371_s30 + $0x8] sm:$0xff]  ;;  %s4810_s29 = scalar_lea.vmem %s5745_s4, %s4540_s17  ;;  %s5478_s17 = scalar_lea.vmem [#allocation3], %s4554_s7 }
  0x22   : > { %3930 = vmatprep.subr.bf16.mxu1 %v3929_v10  ;;  %3741 = vmatprep.mubr.msk.f32.mxu1 %vm480_vm0, %v4570_v12  ;;  %v3937_v16 = vpack.c.bf16 %v467_v15, %v466_v14  ;;  %v452_v17 = vld [vmem:[%s371_s30] sm:$0xff]  ;;  %v454_v19 = vld [vmem:[%s371_s30 + $0x10] sm:$0xff]  ;;  %v455_v21 = vld [vmem:[%s371_s30 + $0x18] sm:$0xff] }
  0x23   : > { %v3909_v20 = vpack.c.bf16 %v453_v18, %v452_v17  ;;  %v4586_v22 = vld [vmem:[%s4567_s18 + $0x8] sm:$0xff]  ;;  %v3913_v23 = vpack.c.bf16 %v455_v21, %v454_v19  ;;  %v456_v24 = vld [vmem:[%s371_s30 + $0x20] sm:$0xff]  ;;  %v4589_v26 = vld [vmem:[%s4567_s18 + $0x10] sm:$0xff] }
  0x24   : > { %v457_v25 = vld [vmem:[%s371_s30 + $0x28] sm:$0xff]  ;;  %v388_v27 = vld [vmem:[%s4583_s15] sm:$0xff]  ;;  %v4598_v29 = vld [vmem:[%s4567_s18 + $0x18] sm:$0xff] }
  0x25   : > { %3932 = vmatpush3.bf16.msra.mxu1 %v3929_v10  ;;  %3910 = vmatprep.subr.bf16.mxu0 %v3909_v20  ;;  %v3917_v28 = vpack.c.bf16 %v457_v25, %v456_v24  ;;  %v458_v30 = vld [vmem:[%s371_s30 + $0x30] sm:$0xff]  ;;  %v459_v31 = vld [vmem:[%s371_s30 + $0x38] sm:$0xff]  ;;  %v4601_v32 = vld [vmem:[%s4567_s18 + $0x20] sm:$0xff] }
  0x26   : > { %3934 = vmatprep.subr.bf16.mxu1 %v3933_v13  ;;  %3912 = vmatpush3.bf16.msra.mxu0 %v3909_v20  ;;  %v3921_v33 = vpack.c.bf16 %v459_v31, %v458_v30  ;;  %v4608_v34 = vld [vmem:[%s4567_s18 + $0x28] sm:$0xff]  ;;  %v4611_v35 = vld [vmem:[%s4567_s18 + $0x30] sm:$0xff]  ;;  %v4618_v36 = vld [vmem:[%s4567_s18 + $0x38] sm:$0xff] }
  0x27   : > { %3677 = vmatprep.mubr.msk.f32.mxu0 %vm480_vm0, %v388_v27  ;;  %3914 = vmatprep.subr.bf16.mxu0 %v3913_v23  ;;  %v4621_v37 = vld [vmem:[%s4567_s18 + $0x40] sm:$0xff]  ;;  %v389_v38 = vld [vmem:[%s4583_s15 + $0x8] sm:$0xff]  ;;  %v390_v39 = vld [vmem:[%s4583_s15 + $0x10] sm:$0xff] }
  0x28   : > { %v4630_v40 = vld [vmem:[%s4567_s18 + $0x48] sm:$0xff]  ;;  %v4633_v41 = vld [vmem:[%s4567_s18 + $0x50] sm:$0xff]  ;;  %v391_v42 = vld [vmem:[%s4583_s15 + $0x18] sm:$0xff] }
  0x29   : > { %3936 = vmatpush3.bf16.msra.mxu1 %v3933_v13  ;;  %v392_v43 = vld [vmem:[%s4583_s15 + $0x20] sm:$0xff]  ;;  %v4644_v44 = vld [vmem:[%s4567_s18 + $0x58] sm:$0xff]  ;;  %v393_v46 = vld [vmem:[%s4583_s15 + $0x28] sm:$0xff] }
  0x2a   : > { %3938 = vmatprep.subr.bf16.mxu1 %v3937_v16  ;;  %3916 = vmatpush3.bf16.msra.mxu0 %v3913_v23  ;;  %v4647_v45 = vld [vmem:[%s4567_s18 + $0x60] sm:$0xff]  ;;  %v394_v47 = vld [vmem:[%s4583_s15 + $0x30] sm:$0xff]  ;;  %v4658_v48 = vld [vmem:[%s4567_s18 + $0x68] sm:$0xff] }
  0x2b   : > { %3918 = vmatprep.subr.bf16.mxu0 %v3917_v28  ;;  %v4661_v49 = vld [vmem:[%s4567_s18 + $0x70] sm:$0xff]  ;;  %v395_v50 = vld [vmem:[%s4583_s15 + $0x38] sm:$0xff]  ;;  %v396_v51 = vld [vmem:[%s4583_s15 + $0x40] sm:$0xff] }
  0x2c   : > { %v4672_v52 = vld [vmem:[%s4567_s18 + $0x78] sm:$0xff]  ;;  %v4675_v53 = vld [vmem:[%s4567_s18 + $0x80] sm:$0xff]  ;;  %v397_v54 = vld [vmem:[%s4583_s15 + $0x48] sm:$0xff] }
  0x2d   : > { %3940 = vmatpush3.bf16.msra.mxu1 %v3937_v16  ;;  %v398_v55 = vld [vmem:[%s4583_s15 + $0x50] sm:$0xff]  ;;  %v4686_v56 = vld [vmem:[%s4567_s18 + $0x88] sm:$0xff]  ;;  %v399_v58 = vld [vmem:[%s4583_s15 + $0x58] sm:$0xff] }
  0x2e   : > { %3920 = vmatpush3.bf16.msra.mxu0 %v3917_v28  ;;  %v4689_v57 = vld [vmem:[%s4567_s18 + $0x90] sm:$0xff]  ;;  %v400_v59 = vld [vmem:[%s4583_s15 + $0x60] sm:$0xff]  ;;  %v4700_v60 = vld [vmem:[%s4567_s18 + $0x98] sm:$0xff] }
  0x2f   : > { %3922 = vmatprep.subr.bf16.mxu0 %v3921_v33  ;;  %v4703_v61 = vld [vmem:[%s4567_s18 + $0xa0] sm:$0xff]  ;;  %v401_v62 = vld [vmem:[%s4583_s15 + $0x68] sm:$0xff]  ;;  %v402_v63 = vld [vmem:[%s4583_s15 + $0x70] sm:$0xff] }
  0x30   : > { %3742 = vmatmul.mubr.msk.f32.vlgmr.msra.gmra.mrb[0].mxu1 %vm480_vm0, %v4586_v22  ;;  %v4714_v0 = vld [vmem:[%s4567_s18 + $0xa8] sm:$0xff]  ;;  %v4717_v1 = vld [vmem:[%s4567_s18 + $0xb0] sm:$0xff]  ;;  %v403_v6 = vld [vmem:[%s4583_s15 + $0x78] sm:$0xff] }
  0x31   : > { %3744 = vmatprep.mubr.msk.f32.mxu1 %vm480_vm0, %v4589_v26  ;;  %v404_v7 = vld [vmem:[%s4583_s15 + $0x80] sm:$0xff]  ;;  %v4728_v8 = vld [vmem:[%s4567_s18 + $0xb8] sm:$0xff]  ;;  %v405_v10 = vld [vmem:[%s4583_s15 + $0x88] sm:$0xff] }
  0x32   : > { %3924 = vmatpush3.bf16.msra.mxu0 %v3921_v33  ;;  %v4731_v9 = vld [vmem:[%s4567_s18 + $0xc0] sm:$0xff]  ;;  %v406_v11 = vld [vmem:[%s4583_s15 + $0x90] sm:$0xff]  ;;  %v4742_v13 = vld [vmem:[%s4567_s18 + $0xc8] sm:$0xff] }
  0x33   : > { %v4745_v14 = vld [vmem:[%s4567_s18 + $0xd0] sm:$0xff]  ;;  %v407_v15 = vld [vmem:[%s4583_s15 + $0x98] sm:$0xff]  ;;  %v408_v16 = vld [vmem:[%s4583_s15 + $0xa0] sm:$0xff] }
  0x34   : > { %3745 = vmatmul.mubr.msk.f32.gmra.mrb[2].mxu1 %vm480_vm0, %v4598_v29  ;;  %v4756_v17 = vld [vmem:[%s4567_s18 + $0xd8] sm:$0xff]  ;;  %v4759_v18 = vld [vmem:[%s4567_s18 + $0xe0] sm:$0xff]  ;;  %v409_v19 = vld [vmem:[%s4583_s15 + $0xa8] sm:$0xff] }
  0x35   : > { %3747 = vmatprep.mubr.msk.f32.mxu1 %vm480_vm0, %v4601_v32  ;;  %3678 = vmatmul.mubr.msk.f32.vlgmr.msra.gmra.mrb[0].mxu0 %vm480_vm0, %v389_v38  ;;  %v410_v20 = vld [vmem:[%s4583_s15 + $0xb0] sm:$0xff]  ;;  %v4770_v21 = vld [vmem:[%s4567_s18 + $0xe8] sm:$0xff]  ;;  %v411_v24 = vld [vmem:[%s4583_s15 + $0xb8] sm:$0xff] }
  0x36   : > { %3680 = vmatprep.mubr.msk.f32.mxu0 %vm480_vm0, %v390_v39  ;;  %v4773_v23 = vld [vmem:[%s4567_s18 + $0xf0] sm:$0xff]  ;;  %v412_v25 = vld [vmem:[%s4583_s15 + $0xc0] sm:$0xff]  ;;  %v4784_v27 = vld [vmem:[%s4567_s18 + $0xf8] sm:$0xff] }
  0x37   : > { %5772 = vst [vmem:[#allocation12_spill] sm:$0xff] %v4784_v27  ;;  %v413_v28 = vld [vmem:[%s4583_s15 + $0xc8] sm:$0xff]  ;;  %v414_v30 = vld [vmem:[%s4583_s15 + $0xd0] sm:$0xff]  ;;  %v415_v31 = vld [vmem:[%s4583_s15 + $0xd8] sm:$0xff] }
  0x38   : > { %3748 = vmatmul.mubr.msk.f32.gmra.mrb[4].mxu1 %vm480_vm0, %v4608_v34  ;;  %v416_v33 = vld [vmem:[%s4583_s15 + $0xe0] sm:$0xff]  ;;  %v417_v38 = vld [vmem:[%s4583_s15 + $0xe8] sm:$0xff]  ;;  %v418_v39 = vld [vmem:[%s4583_s15 + $0xf0] sm:$0xff] }
  0x39   : > { %3750 = vmatprep.mubr.msk.f32.mxu1 %vm480_vm0, %v4611_v35  ;;  %3681 = vmatmul.mubr.msk.f32.gmra.mrb[2].mxu0 %vm480_vm0, %v391_v42  ;;  %v419_v42 = vld [vmem:[%s4583_s15 + $0xf8] sm:$0xff] }
  0x3a   : > { %3683 = vmatprep.mubr.msk.f32.mxu0 %vm480_vm0, %v392_v43 }
  0x3c   : > { %3751 = vmatmul.mubr.msk.f32.gmra.mrb[6].mxu1 %vm480_vm0, %v4618_v36 }
  0x3d   : > { %3753 = vmatprep.mubr.msk.f32.mxu1 %vm480_vm0, %v4621_v37  ;;  %3684 = vmatmul.mubr.msk.f32.gmra.mrb[4].mxu0 %vm480_vm0, %v393_v46 }
  0x3e   : > { %3686 = vmatprep.mubr.msk.f32.mxu0 %vm480_vm0, %v394_v47  ;;  %v468_v47 = vld [vmem:[%s4810_s29] sm:$0xff] }
  0x40   : > { %3754 = vmatmul.mubr.msk.f32.gmra.mrb[8].mxu1 %vm480_vm0, %v4630_v40 }
  0x41   : > { %3756 = vmatprep.mubr.msk.f32.mxu1 %vm480_vm0, %v4633_v41  ;;  %3687 = vmatmul.mubr.msk.f32.gmra.mrb[6].mxu0 %vm480_vm0, %v395_v50  ;;  %v469_v50 = vld [vmem:[%s4810_s29 + $0x8] sm:$0xff] }
  0x42   : > { %3689 = vmatprep.mubr.msk.f32.mxu0 %vm480_vm0, %v396_v51 }
  0x44   : > { %3757 = vmatmul.mubr.msk.f32.gmra.mrb[10].mxu1 %vm480_vm0, %v4644_v44 }
  0x45   : > { %3759 = vmatprep.mubr.msk.f32.mxu1 %vm480_vm0, %v4647_v45  ;;  %3690 = vmatmul.mubr.msk.f32.gmra.mrb[8].mxu0 %vm480_vm0, %v397_v54  ;;  %v3941_v54 = vpack.c.bf16 %v469_v50, %v468_v47 }
  0x46   : > { %3692 = vmatprep.mubr.msk.f32.mxu0 %vm480_vm0, %v398_v55 }
  0x47   : > { %3942 = vmatprep.subr.bf16.mxu0 %v3941_v54 }
  0x48   : > { %3760 = vmatmul.mubr.msk.f32.gmra.mrb[12].mxu1 %vm480_vm0, %v4658_v48  ;;  %3944 = vmatpush3.bf16.msra.mxu0 %v3941_v54 }
  0x49   : > { %3762 = vmatprep.mubr.msk.f32.mxu1 %vm480_vm0, %v4661_v49  ;;  %3693 = vmatmul.mubr.msk.f32.gmra.mrb[10].mxu0 %vm480_vm0, %v399_v58 }
  0x4a   : > { %3695 = vmatprep.mubr.msk.f32.mxu0 %vm480_vm0, %v400_v59 }
  0x4c   : > { %3763 = vmatmul.mubr.msk.f32.gmra.mrb[14].mxu1 %vm480_vm0, %v4672_v52 }
  0x4d   : > { %3765 = vmatprep.mubr.msk.f32.mxu1 %vm480_vm0, %v4675_v53  ;;  %3696 = vmatmul.mubr.msk.f32.gmra.mrb[12].mxu0 %vm480_vm0, %v401_v62 }
  0x4e   : > { %3698 = vmatprep.mubr.msk.f32.mxu0 %vm480_vm0, %v402_v63  ;;  %v473_v63 = vld [vmem:[%s4810_s29 + $0x28] sm:$0xff] }
  0x50   : > { %3766 = vmatmul.mubr.msk.f32.gmra.mrb[16].mxu1 %vm480_vm0, %v4686_v56 }
  0x51   : > { %3768 = vmatprep.mubr.msk.f32.mxu1 %vm480_vm0, %v4689_v57  ;;  %3699 = vmatmul.mubr.msk.f32.gmra.mrb[14].mxu0 %vm480_vm0, %v403_v6 }
  0x52   : > { %3701 = vmatprep.mubr.msk.f32.mxu0 %vm480_vm0, %v404_v7 }
  0x54   : > { %3769 = vmatmul.mubr.msk.f32.gmra.mrb[18].mxu1 %vm480_vm0, %v4700_v60 }
  0x55   : > { %3771 = vmatprep.mubr.msk.f32.mxu1 %vm480_vm0, %v4703_v61  ;;  %3702 = vmatmul.mubr.msk.f32.gmra.mrb[16].mxu0 %vm480_vm0, %v405_v10  ;;  %v472_v10 = vld [vmem:[%s4810_s29 + $0x20] sm:$0xff] }
  0x56   : > { %3704 = vmatprep.mubr.msk.f32.mxu0 %vm480_vm0, %v406_v11  ;;  %v3949_v4 = vpack.c.bf16 %v473_v63, %v472_v10 }
  0x58   : > { %3772 = vmatmul.mubr.msk.f32.gmra.mrb[20].mxu1 %vm480_vm0, %v4714_v0 }
  0x59   : > { %3774 = vmatprep.mubr.msk.f32.mxu1 %vm480_vm0, %v4717_v1  ;;  %3705 = vmatmul.mubr.msk.f32.gmra.mrb[18].mxu0 %vm480_vm0, %v407_v15 }
  0x5a   : > { %3707 = vmatprep.mubr.msk.f32.mxu0 %vm480_vm0, %v408_v16 }
  0x5c   : > { %3775 = vmatmul.mubr.msk.f32.gmra.mrb[22].mxu1 %vm480_vm0, %v4728_v8 }
  0x5d   : > { %3777 = vmatprep.mubr.msk.f32.mxu1 %vm480_vm0, %v4731_v9  ;;  %3708 = vmatmul.mubr.msk.f32.gmra.mrb[20].mxu0 %vm480_vm0, %v409_v19 }
  0x5e   : > { %3710 = vmatprep.mubr.msk.f32.mxu0 %vm480_vm0, %v410_v20  ;;  %v470_v20 = vld [vmem:[%s4810_s29 + $0x10] sm:$0xff] }
  0x60   : > { %3778 = vmatmul.mubr.msk.f32.gmra.mrb[24].mxu1 %vm480_vm0, %v4742_v13 }
  0x61   : > { %3780 = vmatprep.mubr.msk.f32.mxu1 %vm480_vm0, %v4745_v14  ;;  %3711 = vmatmul.mubr.msk.f32.gmra.mrb[22].mxu0 %vm480_vm0, %v411_v24  ;;  %v471_v24 = vld [vmem:[%s4810_s29 + $0x18] sm:$0xff] }
  0x62   : > { %3713 = vmatprep.mubr.msk.f32.mxu0 %vm480_vm0, %v412_v25 }
  0x64   : > { %3781 = vmatmul.mubr.msk.f32.gmra.mrb[26].mxu1 %vm480_vm0, %v4756_v17 }
  0x65   : > { %3783 = vmatprep.mubr.msk.f32.mxu1 %vm480_vm0, %v4759_v18  ;;  %3714 = vmatmul.mubr.msk.f32.gmra.mrb[24].mxu0 %vm480_vm0, %v413_v28  ;;  %v3945_v28 = vpack.c.bf16 %v471_v24, %v470_v20 }
  0x66   : > { %3716 = vmatprep.mubr.msk.f32.mxu0 %vm480_vm0, %v414_v30 }
  0x67   : > { %3946 = vmatprep.subr.bf16.mxu0 %v3945_v28 }
  0x68   : > { %3784 = vmatmul.mubr.msk.f32.gmra.mrb[28].mxu1 %vm480_vm0, %v4770_v21  ;;  %3948 = vmatpush3.bf16.msra.mxu0 %v3945_v28 }
  0x69   : > { %3786 = vmatprep.mubr.msk.f32.mxu1 %vm480_vm0, %v4773_v23  ;;  %3717 = vmatmul.mubr.msk.f32.gmra.mrb[26].mxu0 %vm480_vm0, %v415_v31 }
  0x6a   : > { %3719 = vmatprep.mubr.msk.f32.mxu0 %vm480_vm0, %v416_v33  ;;  %3950 = vmatprep.subr.bf16.mxu0 %v3949_v4 }
  0x6c   : > { %3787 = vmatmul.mubr.msk.f32.gmra.mrb[30].mxu1 %vm480_vm0, %v4784_v27  ;;  %3952 = vmatpush3.bf16.msra.mxu0 %v3949_v4 }
  0x6d   : > { %3720 = vmatmul.mubr.msk.f32.gmra.mrb[28].mxu0 %vm480_vm0, %v417_v38 }
  0x6e   : > { %3722 = vmatprep.mubr.msk.f32.mxu0 %vm480_vm0, %v418_v39 }
  0x71   : > { %3723 = vmatmul.mubr.msk.f32.gmra.mrb[30].mxu0 %vm480_vm0, %v419_v42 }
  0x72   : > { %3805 = vmatprep.mubr.msk.f32.mxu0 %vm480_vm0, %v4570_v12 }
 0x103   : > { %v3743_v43 = vpop.f32.mrb[0].mxu1 }
 0x104   : > { %v996_v46 = vpop.f32.mrb[1].mxu1 }
 0x105   : > { %v3960_v51 = vpack.c.bf16 %v3743_v43, %v996_v46 }
 0x107   : > { %v4814_v55 = vpop.f32.mrb[2].mxu1 }
 0x108   : > { %v4816_v58 = vpop.f32.mrb[3].mxu1  ;;  %v4832_v11 = vpop.f32.mrb[0].mxu0 }
 0x109   : > { %v3966_v12 = vpack.c.bf16 %v4814_v55, %v4816_v58  ;;  %v643_v15 = vpop.f32.mrb[1].mxu0 }
 0x10a   : > { %v4836_v19 = vmul.f32 0.17677669, %v643_v15 }
 0x10b   : > { %v4820_v59 = vpop.f32.mrb[4].mxu1 }
 0x10c   : > { %v4822_v62 = vpop.f32.mrb[5].mxu1  ;;  %3561 = vmatprep.mubr.msk.f32.mxu1 %vm1380_vm1, %v4836_v19  ;;  %v4846_v31 = vpop.f32.mrb[2].mxu0 }
 0x10d   : > { %v4848_v33 = vpop.f32.mrb[3].mxu0 }
 0x10f   : > { %v4826_v6 = vpop.f32.mrb[6].mxu1 }
 0x110   : > { %v4828_v7 = vpop.f32.mrb[7].mxu1  ;;  %v4856_v43 = vpop.f32.mrb[4].mxu0 }
 0x111   : > { %v4858_v46 = vpop.f32.mrb[5].mxu0 }
 0x113   : > { %v4834_v16 = vpop.f32.mrb[8].mxu1 }
 0x114   : > { %v4840_v25 = vpop.f32.mrb[9].mxu1  ;;  %v4866_v55 = vpop.f32.mrb[6].mxu0 }
 0x115   : > { %5773 = vst [vmem:[#allocation13_spill] sm:$0xff] %v4866_v55  ;;  %v4868_v58 = vpop.f32.mrb[7].mxu0 }
 0x116   : > { %5774 = vst [vmem:[#allocation14_spill] sm:$0xff] %v4868_v58 }
 0x117   : > { %v4850_v38 = vpop.f32.mrb[10].mxu1 }
 0x118   : > { %v4852_v39 = vpop.f32.mrb[11].mxu1  ;;  %v4876_v28 = vpop.f32.mrb[8].mxu0 }
 0x119   : > { %5775 = vst [vmem:[#allocation15_spill] sm:$0xff] %v4876_v28  ;;  %v4878_v42 = vpop.f32.mrb[9].mxu0 }
 0x11a   : > { %5776 = vst [vmem:[#allocation16_spill] sm:$0xff] %v4878_v42 }
 0x11b   : > { %v4860_v47 = vpop.f32.mrb[12].mxu1 }
 0x11c   : > { %v4862_v50 = vpop.f32.mrb[13].mxu1  ;;  %v4888_v2 = vpop.f32.mrb[10].mxu0 }
 0x11d   : > { %5779 = vst [vmem:[#allocation17_spill] sm:$0xff] %v4888_v2  ;;  %v4890_v55 = vpop.f32.mrb[11].mxu0 }
 0x11e   : > { %5780 = vst [vmem:[#allocation18_spill] sm:$0xff] %v4890_v55 }
 0x11f   : > { %v4870_v15 = vpop.f32.mrb[14].mxu1 }
 0x120   : > { %v4872_v20 = vpop.f32.mrb[15].mxu1  ;;  %v4896_v58 = vpop.f32.mrb[12].mxu0 }
 0x121   : > { %5781 = vst [vmem:[#allocation19_spill] sm:$0xff] %v4896_v58  ;;  %v4898_v63 = vpop.f32.mrb[13].mxu0 }
 0x122   : > { %5782 = vst [vmem:[#allocation20_spill] sm:$0xff] %v4898_v63  ;;  %v474_v63 = vld [vmem:[%s4810_s29 + $0x30] sm:$0xff] }
 0x123   : > { %v3767_v30 = vpop.f32.mrb[16].mxu1 }
 0x124   : > { %v1076_v5 = vpop.f32.mrb[17].mxu1 }
 0x125   : > { %v3957_v3 = vpack.c.bf16 %v3767_v30, %v1076_v5 }
 0x127   : > { %3959 = vmatprep.subr.msk.bf16.mxu1 %vm4884_vm2, %v3957_v3  ;;  %v3770_v24 = vpop.f32.mrb[18].mxu1  ;;  %v4902_v3 = vpop.f32.mrb[14].mxu0 }
 0x128   : > { %3962 = vmatpush3.bf16.xpose.msk.msra.mxu1 %vm4884_vm2, %v3960_v51  ;;  %v1086_v28 = vpop.f32.mrb[19].mxu1  ;;  %5783 = vst [vmem:[#allocation21_spill] sm:$0xff] %v4902_v3  ;;  %v4904_v4 = vpop.f32.mrb[15].mxu0 }
 0x129   : > { %v3963_v42 = vpack.c.bf16 %v3770_v24, %v1086_v28  ;;  %5784 = vst [vmem:[#allocation22_spill] sm:$0xff] %v4904_v4  ;;  %v4910_v28 = vpop.f32.mrb[16].mxu0 }
 0x12a   : > { %v4912_v58 = vpop.f32.mrb[17].mxu0 }
 0x12b   : > { %3965 = vmatprep.subr.msk.bf16.mxu1 %vm4884_vm2, %v3963_v42  ;;  %v3773_v5 = vpop.f32.mrb[20].mxu1 }
 0x12c   : > { %v1096_v10 = vpop.f32.mrb[21].mxu1  ;;  %v4916_v4 = vpop.f32.mrb[18].mxu0 }
 0x12d   : > { %v3969_v30 = vpack.c.bf16 %v3773_v5, %v1096_v10  ;;  %v475_v5 = vld [vmem:[%s4810_s29 + $0x38] sm:$0xff]  ;;  %v4918_v27 = vpop.f32.mrb[19].mxu0 }
 0x12e   : > { %v3953_v3 = vpack.c.bf16 %v475_v5, %v474_v63 }
 0x12f   : > { %v3776_v2 = vpop.f32.mrb[22].mxu1 }
 0x130   : > { %3968 = vmatpush3.bf16.xpose.msk.msra.mxu1 %vm4884_vm2, %v3966_v12  ;;  %v1106_v51 = vpop.f32.mrb[23].mxu1  ;;  %3954 = vmatprep.subr.bf16.mxu0 %v3953_v3  ;;  %v4927_v63 = vpop.f32.mrb[20].mxu0 }
 0x131   : > { %3971 = vmatprep.subr.msk.bf16.mxu1 %vm4884_vm2, %v3969_v30  ;;  %v3975_v24 = vpack.c.bf16 %v3776_v2, %v1106_v51  ;;  %3956 = vmatpush3.bf16.msra.mxu0 %v3953_v3  ;;  %v5785_v2 = vpack.c.bf16 %v4820_v59, %v4822_v62 }
 0x133   : > { %v3779_v42 = vpop.f32.mrb[24].mxu1 }
 0x134   : > { %v1116_v10 = vpop.f32.mrb[25].mxu1  ;;  %3806 = vmatmul.mubr.msk.f32.vlgmr.msra.gmra.mrb[32].mxu0 %vm480_vm0, %v4586_v22  ;;  %v5786_v22 = vpack.c.bf16 %v4826_v6, %v4828_v7  ;;  %v5798_v6 = vld [vmem:[#allocation20_spill] sm:$0xff] }
 0x135   : > { %v3981_v55 = vpack.c.bf16 %v3779_v42, %v1116_v10  ;;  %v4929_v42 = vpop.f32.mrb[21].mxu0  ;;  %3808 = vmatprep.mubr.msk.f32.mxu0 %vm480_vm0, %v4589_v26  ;;  %v814_v7 = vmul.f32 0.17677669, %v5798_v6 }
 0x136   : > { %v4935_v3 = vpop.f32.mrb[22].mxu0 }
 0x137   : > { %v3782_v12 = vpop.f32.mrb[26].mxu1  ;;  %v4937_v10 = vpop.f32.mrb[23].mxu0  ;;  %v825_v54 = vmul.f32 0.17677669, %v4935_v3 }
 0x138   : > { %3974 = vmatpush3.bf16.xpose.msk.msra.mxu1 %vm4884_vm2, %v5785_v2  ;;  %v1126_v30 = vpop.f32.mrb[27].mxu1  ;;  %3809 = vmatmul.mubr.msk.f32.gmra.mrb[34].mxu0 %vm480_vm0, %v4598_v29  ;;  %v4950_v2 = vpop.f32.mrb[24].mxu0  ;;  %v5787_v29 = vpack.c.bf16 %v4834_v16, %v4840_v25 }
 0x139   : > { %3977 = vmatprep.subr.msk.bf16.mxu1 %vm4884_vm2, %v3975_v24  ;;  %v3987_v51 = vpack.c.bf16 %v3782_v12, %v1126_v30  ;;  %3811 = vmatprep.mubr.msk.f32.mxu0 %vm480_vm0, %v4601_v32  ;;  %v4952_v30 = vpop.f32.mrb[25].mxu0 }
 0x13b   : > { %v3785_v5 = vpop.f32.mrb[28].mxu1 }
 0x13c   : > { %v1136_v59 = vpop.f32.mrb[29].mxu1  ;;  %3812 = vmatmul.mubr.msk.f32.gmra.mrb[36].mxu0 %vm480_vm0, %v4608_v34  ;;  %v4967_v32 = vpop.f32.mrb[26].mxu0 }
 0x13d   : > { %v3993_v62 = vpack.c.bf16 %v3785_v5, %v1136_v59  ;;  %3814 = vmatprep.mubr.msk.f32.mxu0 %vm480_vm0, %v4611_v35  ;;  %v4971_v34 = vpop.f32.mrb[27].mxu0  ;;  %v5788_v35 = vpack.c.bf16 %v4850_v38, %v4852_v39  ;;  %v818_v38 = vmul.f32 0.17677669, %v4912_v58  ;;  %v819_v39 = vmul.f32 0.17677669, %v4910_v28 }
 0x13e   : > { %v827_v58 = vmul.f32 0.17677669, %v4950_v2 }
 0x13f   : > { %v3788_v24 = vpop.f32.mrb[30].mxu1 }
 0x140   : > { %3980 = vmatpush3.bf16.xpose.msk.msra.mxu1 %vm4884_vm2, %v5786_v22  ;;  %v1146_v26 = vpop.f32.mrb[31].mxu1  ;;  %3815 = vmatmul.mubr.msk.f32.gmra.mrb[38].mxu0 %vm480_vm0, %v4618_v36  ;;  %v4986_v36 = vpop.f32.mrb[28].mxu0 }
 0x141   : > { %3983 = vmatprep.subr.msk.bf16.mxu1 %vm4884_vm2, %v3981_v55  ;;  %v3999_v12 = vpack.c.bf16 %v3788_v24, %v1146_v26  ;;  %3817 = vmatprep.mubr.msk.f32.mxu0 %vm480_vm0, %v4621_v37  ;;  %v4990_v37 = vpop.f32.mrb[29].mxu0  ;;  %v826_v55 = vmul.f32 0.17677669, %v4952_v30  ;;  %v831_v28 = vmul.f32 0.17677669, %v4986_v36 }
 0x144   : > { %3818 = vmatmul.mubr.msk.f32.gmra.mrb[40].mxu0 %vm480_vm0, %v4630_v40  ;;  %v5789_v40 = vpack.c.bf16 %v4860_v47, %v4862_v50  ;;  %v822_v47 = vmul.f32 0.17677669, %v4929_v42  ;;  %v823_v50 = vmul.f32 0.17677669, %v4927_v63 }
 0x145   : > { %3820 = vmatprep.mubr.msk.f32.mxu0 %vm480_vm0, %v4633_v41  ;;  %v5007_v41 = vpop.f32.mrb[30].mxu0 }
 0x146   : > { %v833_v63 = vmul.f32 0.17677669, %v5007_v41 }
 0x148   : > { %3986 = vmatpush3.bf16.xpose.msk.msra.mxu1 %vm4884_vm2, %v5787_v29  ;;  %3821 = vmatmul.mubr.msk.f32.gmra.mrb[42].mxu0 %vm480_vm0, %v4644_v44  ;;  %v5009_v44 = vpop.f32.mrb[31].mxu0 }
 0x149   : > { %3989 = vmatprep.subr.msk.bf16.mxu1 %vm4884_vm2, %v3987_v51  ;;  %3823 = vmatprep.mubr.msk.f32.mxu0 %vm480_vm0, %v4647_v45  ;;  %v5790_v45 = vpack.c.bf16 %v4870_v15, %v4872_v20  ;;  %v828_v15 = vmul.f32 0.17677669, %v4971_v34  ;;  %v829_v20 = vmul.f32 0.17677669, %v4967_v32  ;;  %v832_v51 = vmul.f32 0.17677669, %v5009_v44 }
 0x14c   : > { %3824 = vmatmul.mubr.msk.f32.gmra.mrb[44].mxu0 %vm480_vm0, %v4658_v48  ;;  %v803_v48 = vmul.f32 0.17677669, %v4832_v11  ;;  %v5799_v11 = vld [vmem:[#allocation19_spill] sm:$0xff] }
 0x14d   : > { %3826 = vmatprep.mubr.msk.f32.mxu0 %vm480_vm0, %v4661_v49  ;;  %v804_v49 = vmul.f32 0.17677669, %v4848_v33  ;;  %v815_v16 = vmul.f32 0.17677669, %v5799_v11 }
 0x150   : > { %3992 = vmatpush3.bf16.xpose.msk.msra.mxu1 %vm4884_vm2, %v5788_v35  ;;  %3827 = vmatmul.mubr.msk.f32.gmra.mrb[46].mxu0 %vm480_vm0, %v4672_v52  ;;  %v805_v52 = vmul.f32 0.17677669, %v4846_v31  ;;  %v5801_v31 = vld [vmem:[#allocation21_spill] sm:$0xff] }
 0x151   : > { %3995 = vmatprep.subr.msk.bf16.mxu1 %vm4884_vm2, %v3993_v62  ;;  %3829 = vmatprep.mubr.msk.f32.mxu0 %vm480_vm0, %v4675_v53  ;;  %v806_v53 = vmul.f32 0.17677669, %v4858_v46  ;;  %v817_v33 = vmul.f32 0.17677669, %v5801_v31  ;;  %v821_v46 = vmul.f32 0.17677669, %v4916_v4 }
 0x152   : > { %v830_v4 = vmul.f32 0.17677669, %v4990_v37  ;;  %v4424_v62 = vmov 0.0|0.0  }
 0x153   : > { %4005 = vmatprep.subr.bf16.mxu0 %v4424_v62 }
 0x154   : > { %3830 = vmatmul.mubr.msk.f32.gmra.mrb[48].mxu0 %vm480_vm0, %v4686_v56  ;;  %v807_v56 = vmul.f32 0.17677669, %v4856_v43  ;;  %v820_v43 = vmul.f32 0.17677669, %v4918_v27  ;;  %v824_v27 = vmul.f32 0.17677669, %v4937_v10 }
 0x155   : > { %3832 = vmatprep.mubr.msk.f32.mxu0 %vm480_vm0, %v4689_v57  ;;  %v5791_v57 = vld [vmem:[#allocation12_spill] sm:$0xff] }
 0x158   : > { %3998 = vmatpush3.bf16.xpose.msk.msra.mxu1 %vm4884_vm2, %v5789_v40  ;;  %3833 = vmatmul.mubr.msk.f32.gmra.mrb[50].mxu0 %vm480_vm0, %v4700_v60  ;;  %v5792_v60 = vld [vmem:[#allocation14_spill] sm:$0xff] }
 0x159   : > { %4001 = vmatprep.subr.msk.bf16.mxu1 %vm4884_vm2, %v3999_v12  ;;  %3835 = vmatprep.mubr.msk.f32.mxu0 %vm480_vm0, %v4703_v61  ;;  %v808_v61 = vmul.f32 0.17677669, %v5792_v60 }
 0x15c   : > { %3836 = vmatmul.mubr.msk.f32.gmra.mrb[52].mxu0 %vm480_vm0, %v4714_v0  ;;  %v5793_v0 = vld [vmem:[#allocation13_spill] sm:$0xff] }
 0x15d   : > { %3838 = vmatprep.mubr.msk.f32.mxu0 %vm480_vm0, %v4717_v1  ;;  %v809_v1 = vmul.f32 0.17677669, %v5793_v0 }
 0x160   : > { %4004 = vmatpush3.bf16.xpose.msk.msra.mxu1 %vm4884_vm2, %v5790_v45  ;;  %3839 = vmatmul.mubr.msk.f32.gmra.mrb[54].mxu0 %vm480_vm0, %v4728_v8  ;;  %v5794_v8 = vld [vmem:[#allocation16_spill] sm:$0xff] }
 0x161   : > { %3841 = vmatprep.mubr.msk.f32.mxu0 %vm480_vm0, %v4731_v9  ;;  %v810_v9 = vmul.f32 0.17677669, %v5794_v8 }
 0x164   : > { %3842 = vmatmul.mubr.msk.f32.gmra.mrb[56].mxu0 %vm480_vm0, %v4742_v13  ;;  %v5795_v13 = vld [vmem:[#allocation15_spill] sm:$0xff] }
 0x165   : > { %3844 = vmatprep.mubr.msk.f32.mxu0 %vm480_vm0, %v4745_v14  ;;  %v811_v14 = vmul.f32 0.17677669, %v5795_v13 }
 0x167   : > { %3562 = vmatmul.mubr.msk.f32.vlgmr.msra.gmra.mrb[32].mxu1 %vm1380_vm1, %v4836_v19  ;;  %v5800_v19 = vld [vmem:[#allocation22_spill] sm:$0xff] }
 0x168   : > { %3563 = vmatprep.mubr.msk.f32.mxu1 %vm1380_vm1, %v803_v48  ;;  %3845 = vmatmul.mubr.msk.f32.gmra.mrb[58].mxu0 %vm480_vm0, %v4756_v17  ;;  %v5796_v17 = vld [vmem:[#allocation18_spill] sm:$0xff]  ;;  %v816_v25 = vmul.f32 0.17677669, %v5800_v19 }
 0x169   : > { %3847 = vmatprep.mubr.msk.f32.mxu0 %vm480_vm0, %v4759_v18  ;;  %v812_v18 = vmul.f32 0.17677669, %v5796_v17 }
 0x16b   : > { %3564 = vmatmul.mubr.msk.f32.gmra.mrb[34].mxu1 %vm1380_vm1, %v803_v48 }
 0x16c   : > { %3565 = vmatprep.mubr.msk.f32.mxu1 %vm1380_vm1, %v804_v49  ;;  %3848 = vmatmul.mubr.msk.f32.gmra.mrb[60].mxu0 %vm480_vm0, %v4770_v21  ;;  %v5797_v21 = vld [vmem:[#allocation17_spill] sm:$0xff] }
 0x16d   : > { %3850 = vmatprep.mubr.msk.f32.mxu0 %vm480_vm0, %v4773_v23  ;;  %v813_v23 = vmul.f32 0.17677669, %v5797_v21 }
 0x16f   : > { %3566 = vmatmul.mubr.msk.f32.gmra.mrb[36].mxu1 %vm1380_vm1, %v804_v49 }
 0x170   : > { %3567 = vmatprep.mubr.msk.f32.mxu1 %vm1380_vm1, %v805_v52  ;;  %3851 = vmatmul.mubr.msk.f32.gmra.mrb[62].mxu0 %vm480_vm0, %v5791_v57 }
 0x173   : > { %3568 = vmatmul.mubr.msk.f32.gmra.mrb[38].mxu1 %vm1380_vm1, %v805_v52 }
 0x174   : > { %3569 = vmatprep.mubr.msk.f32.mxu1 %vm1380_vm1, %v806_v53 }
 0x177   : > { %3570 = vmatmul.mubr.msk.f32.gmra.mrb[40].mxu1 %vm1380_vm1, %v806_v53 }
 0x178   : > { %3571 = vmatprep.mubr.msk.f32.mxu1 %vm1380_vm1, %v807_v56 }
 0x17b   : > { %3572 = vmatmul.mubr.msk.f32.gmra.mrb[42].mxu1 %vm1380_vm1, %v807_v56 }
 0x17c   : > { %3573 = vmatprep.mubr.msk.f32.mxu1 %vm1380_vm1, %v808_v61 }
 0x17f   : > { %3574 = vmatmul.mubr.msk.f32.gmra.mrb[44].mxu1 %vm1380_vm1, %v808_v61 }
 0x180   : > { %3575 = vmatprep.mubr.msk.f32.mxu1 %vm1380_vm1, %v809_v1 }
 0x183   : > { %3576 = vmatmul.mubr.msk.f32.gmra.mrb[46].mxu1 %vm1380_vm1, %v809_v1 }
 0x184   : > { %3577 = vmatprep.mubr.msk.f32.mxu1 %vm1380_vm1, %v810_v9 }
 0x187   : > { %3578 = vmatmul.mubr.msk.f32.gmra.mrb[48].mxu1 %vm1380_vm1, %v810_v9 }
 0x188   : > { %3579 = vmatprep.mubr.msk.f32.mxu1 %vm1380_vm1, %v811_v14 }
 0x18b   : > { %3580 = vmatmul.mubr.msk.f32.gmra.mrb[50].mxu1 %vm1380_vm1, %v811_v14 }
 0x18c   : > { %3581 = vmatprep.mubr.msk.f32.mxu1 %vm1380_vm1, %v812_v18 }
 0x18f   : > { %3582 = vmatmul.mubr.msk.f32.gmra.mrb[52].mxu1 %vm1380_vm1, %v812_v18 }
 0x190   : > { %3583 = vmatprep.mubr.msk.f32.mxu1 %vm1380_vm1, %v813_v23 }
 0x193   : > { %3584 = vmatmul.mubr.msk.f32.gmra.mrb[54].mxu1 %vm1380_vm1, %v813_v23 }
 0x194   : > { %3585 = vmatprep.mubr.msk.f32.mxu1 %vm1380_vm1, %v814_v7 }
 0x197   : > { %3586 = vmatmul.mubr.msk.f32.gmra.mrb[56].mxu1 %vm1380_vm1, %v814_v7 }
 0x198   : > { %3587 = vmatprep.mubr.msk.f32.mxu1 %vm1380_vm1, %v815_v16 }
 0x19b   : > { %3588 = vmatmul.mubr.msk.f32.gmra.mrb[58].mxu1 %vm1380_vm1, %v815_v16 }
 0x19c   : > { %3589 = vmatprep.mubr.msk.f32.mxu1 %vm1380_vm1, %v816_v25 }
 0x19f   : > { %3590 = vmatmul.mubr.msk.f32.gmra.mrb[60].mxu1 %vm1380_vm1, %v816_v25 }
 0x1a0   : > { %3591 = vmatprep.mubr.msk.f32.mxu1 %vm1380_vm1, %v817_v33 }
 0x1a3   : > { %3592 = vmatmul.mubr.msk.f32.gmra.mrb[62].mxu1 %vm1380_vm1, %v817_v33 }
 0x1a4   : > { %3593 = vmatprep.mubr.msk.f32.mxu1 %vm1380_vm1, %v818_v38 }
 0x1a7   : > { %3594 = vmatmul.mubr.msk.f32.gmra.mrb[64].mxu1 %vm1380_vm1, %v818_v38 }
 0x1a8   : > { %3595 = vmatprep.mubr.msk.f32.mxu1 %vm1380_vm1, %v819_v39 }
 0x1ab   : > { %3596 = vmatmul.mubr.msk.f32.gmra.mrb[66].mxu1 %vm1380_vm1, %v819_v39 }
 0x1ac   : > { %3597 = vmatprep.mubr.msk.f32.mxu1 %vm1380_vm1, %v820_v43 }
 0x1af   : > { %3598 = vmatmul.mubr.msk.f32.gmra.mrb[68].mxu1 %vm1380_vm1, %v820_v43 }
 0x1b0   : > { %3599 = vmatprep.mubr.msk.f32.mxu1 %vm1380_vm1, %v821_v46 }
 0x1b3   : > { %3600 = vmatmul.mubr.msk.f32.gmra.mrb[70].mxu1 %vm1380_vm1, %v821_v46 }
 0x1b4   : > { %3601 = vmatprep.mubr.msk.f32.mxu1 %vm1380_vm1, %v822_v47 }
 0x1b7   : > { %3602 = vmatmul.mubr.msk.f32.gmra.mrb[72].mxu1 %vm1380_vm1, %v822_v47 }
 0x1b8   : > { %3603 = vmatprep.mubr.msk.f32.mxu1 %vm1380_vm1, %v823_v50 }
 0x1bb   : > { %3604 = vmatmul.mubr.msk.f32.gmra.mrb[74].mxu1 %vm1380_vm1, %v823_v50 }
 0x1bc   : > { %3605 = vmatprep.mubr.msk.f32.mxu1 %vm1380_vm1, %v824_v27 }
 0x1bf   : > { %3606 = vmatmul.mubr.msk.f32.gmra.mrb[76].mxu1 %vm1380_vm1, %v824_v27 }
 0x1c0   : > { %3607 = vmatprep.mubr.msk.f32.mxu1 %vm1380_vm1, %v825_v54 }
 0x1c3   : > { %3608 = vmatmul.mubr.msk.f32.gmra.mrb[78].mxu1 %vm1380_vm1, %v825_v54 }
 0x1c4   : > { %3609 = vmatprep.mubr.msk.f32.mxu1 %vm1380_vm1, %v826_v55 }
 0x1c7   : > { %3610 = vmatmul.mubr.msk.f32.gmra.mrb[80].mxu1 %vm1380_vm1, %v826_v55 }
 0x1c8   : > { %3611 = vmatprep.mubr.msk.f32.mxu1 %vm1380_vm1, %v827_v58 }
 0x1cb   : > { %3612 = vmatmul.mubr.msk.f32.gmra.mrb[82].mxu1 %vm1380_vm1, %v827_v58 }
 0x1cc   : > { %3613 = vmatprep.mubr.msk.f32.mxu1 %vm1380_vm1, %v828_v15 }
 0x1cf   : > { %3614 = vmatmul.mubr.msk.f32.gmra.mrb[84].mxu1 %vm1380_vm1, %v828_v15 }
 0x1d0   : > { %3615 = vmatprep.mubr.msk.f32.mxu1 %vm1380_vm1, %v829_v20 }
 0x1d3   : > { %3616 = vmatmul.mubr.msk.f32.gmra.mrb[86].mxu1 %vm1380_vm1, %v829_v20 }
 0x1d4   : > { %3617 = vmatprep.mubr.msk.f32.mxu1 %vm1380_vm1, %v830_v4 }
 0x1d7   : > { %3618 = vmatmul.mubr.msk.f32.gmra.mrb[88].mxu1 %vm1380_vm1, %v830_v4 }
 0x1d8   : > { %3619 = vmatprep.mubr.msk.f32.mxu1 %vm1380_vm1, %v831_v28 }
 0x1db   : > { %3620 = vmatmul.mubr.msk.f32.gmra.mrb[90].mxu1 %vm1380_vm1, %v831_v28 }
 0x1dc   : > { %3621 = vmatprep.mubr.msk.f32.mxu1 %vm1380_vm1, %v832_v51 }
 0x1df   : > { %3622 = vmatmul.mubr.msk.f32.gmra.mrb[92].mxu1 %vm1380_vm1, %v832_v51 }
 0x1e0   : > { %3623 = vmatprep.mubr.msk.f32.mxu1 %vm1380_vm1, %v833_v63 }
 0x1e3   : > { %3624 = vmatmul.mubr.msk.f32.gmra.mrb[94].mxu1 %vm1380_vm1, %v833_v63 }
 0x207   : > { %v3807_v42 = vpop.f32.mrb[32].mxu0 }
 0x208   : > { %v1221_v5 = vpop.f32.mrb[33].mxu0 }
 0x209   : > { %v4006_v59 = vpack.c.bf16 %v3807_v42, %v1221_v5 }
 0x20b   : > { %v3810_v3 = vpop.f32.mrb[34].mxu0  ;;  %4007 = vmatpush1.bf16.msra.mxu0 %v4006_v59 }
 0x20c   : > { %v1231_v10 = vpop.f32.mrb[35].mxu0  ;;  %4008 = vmatprep.subr.bf16.mxu0 %v4424_v62 }
 0x20d   : > { %v4009_v24 = vpack.c.bf16 %v3810_v3, %v1231_v10 }
 0x20f   : > { %v3813_v22 = vpop.f32.mrb[36].mxu0  ;;  %4010 = vmatpush1.bf16.msra.mxu0 %v4009_v24 }
 0x210   : > { %v1241_v26 = vpop.f32.mrb[37].mxu0  ;;  %4011 = vmatprep.subr.bf16.mxu0 %v4424_v62 }
 0x211   : > { %v4012_v12 = vpack.c.bf16 %v3813_v22, %v1241_v26 }
 0x213   : > { %v3816_v2 = vpop.f32.mrb[38].mxu0  ;;  %4013 = vmatpush1.bf16.msra.mxu0 %v4012_v12 }
 0x214   : > { %v1251_v30 = vpop.f32.mrb[39].mxu0  ;;  %4014 = vmatprep.subr.bf16.mxu0 %v4424_v62 }
 0x215   : > { %v4015_v29 = vpack.c.bf16 %v3816_v2, %v1251_v30 }
 0x217   : > { %v3819_v32 = vpop.f32.mrb[40].mxu0  ;;  %4016 = vmatpush1.bf16.msra.mxu0 %v4015_v29 }
 0x218   : > { %v1261_v34 = vpop.f32.mrb[41].mxu0  ;;  %4017 = vmatprep.subr.bf16.mxu0 %v4424_v62 }
 0x219   : > { %v4018_v35 = vpack.c.bf16 %v3819_v32, %v1261_v34 }
 0x21b   : > { %v3822_v36 = vpop.f32.mrb[42].mxu0  ;;  %4019 = vmatpush1.bf16.msra.mxu0 %v4018_v35 }
 0x21c   : > { %v1271_v37 = vpop.f32.mrb[43].mxu0  ;;  %4020 = vmatprep.subr.bf16.mxu0 %v4424_v62 }
 0x21d   : > { %v4021_v40 = vpack.c.bf16 %v3822_v36, %v1271_v37 }
 0x21f   : > { %v3825_v41 = vpop.f32.mrb[44].mxu0  ;;  %4022 = vmatpush1.bf16.msra.mxu0 %v4021_v40 }
 0x220   : > { %v1281_v44 = vpop.f32.mrb[45].mxu0  ;;  %4023 = vmatprep.subr.bf16.mxu0 %v4424_v62 }
 0x221   : > { %v4024_v45 = vpack.c.bf16 %v3825_v41, %v1281_v44 }
 0x223   : > { %v3828_v48 = vpop.f32.mrb[46].mxu0  ;;  %4025 = vmatpush1.bf16.msra.mxu0 %v4024_v45 }
 0x224   : > { %v1291_v49 = vpop.f32.mrb[47].mxu0  ;;  %4026 = vmatprep.subr.bf16.mxu0 %v4424_v62 }
 0x225   : > { %v4027_v52 = vpack.c.bf16 %v3828_v48, %v1291_v49 }
 0x227   : > { %v3831_v53 = vpop.f32.mrb[48].mxu0  ;;  %4028 = vmatpush1.bf16.msra.mxu0 %v4027_v52 }
 0x228   : > { %v1301_v56 = vpop.f32.mrb[49].mxu0  ;;  %4029 = vmatprep.subr.bf16.mxu0 %v4424_v62 }
 0x229   : > { %v4030_v60 = vpack.c.bf16 %v3831_v53, %v1301_v56 }
 0x22b   : > { %v3834_v61 = vpop.f32.mrb[50].mxu0  ;;  %4031 = vmatpush1.bf16.msra.mxu0 %v4030_v60 }
 0x22c   : > { %v1311_v1 = vpop.f32.mrb[51].mxu0  ;;  %4032 = vmatprep.subr.bf16.mxu0 %v4424_v62 }
 0x22d   : > { %v4033_v9 = vpack.c.bf16 %v3834_v61, %v1311_v1 }
 0x22f   : > { %v3837_v13 = vpop.f32.mrb[52].mxu0  ;;  %4034 = vmatpush1.bf16.msra.mxu0 %v4033_v9 }
 0x230   : > { %v1321_v14 = vpop.f32.mrb[53].mxu0  ;;  %4035 = vmatprep.subr.bf16.mxu0 %v4424_v62 }
 0x231   : > { %v4036_v18 = vpack.c.bf16 %v3837_v13, %v1321_v14 }
 0x233   : > { %v3840_v21 = vpop.f32.mrb[54].mxu0  ;;  %4037 = vmatpush1.bf16.msra.mxu0 %v4036_v18 }
 0x234   : > { %v1331_v6 = vpop.f32.mrb[55].mxu0  ;;  %4038 = vmatprep.subr.bf16.mxu0 %v4424_v62 }
 0x235   : > { %v4039_v11 = vpack.c.bf16 %v3840_v21, %v1331_v6 }
 0x237   : > { %v3843_v16 = vpop.f32.mrb[56].mxu0  ;;  %4040 = vmatpush1.bf16.msra.mxu0 %v4039_v11 }
 0x238   : > { %v1341_v19 = vpop.f32.mrb[57].mxu0  ;;  %4041 = vmatprep.subr.bf16.mxu0 %v4424_v62 }
 0x239   : > { %v4042_v31 = vpack.c.bf16 %v3843_v16, %v1341_v19 }
 0x23a   : > { %v5150_v57 = vpop.f32.mrb[32].mxu1 }
 0x23b   : > { %v5152_v0 = vpop.f32.mrb[33].mxu1  ;;  %4043 = vmatpush1.bf16.msra.mxu0 %v4042_v31  ;;  %v3846_v54 = vpop.f32.mrb[58].mxu0 }
 0x23c   : > { %v1830_v8 = vmax.f32 %v5150_v57, %v5152_v0  ;;  %4044 = vmatprep.subr.bf16.mxu0 %v4424_v62  ;;  %v1351_v58 = vpop.f32.mrb[59].mxu0 }
 0x23d   : > { %v4045_v20 = vpack.c.bf16 %v3846_v54, %v1351_v58 }
 0x23e   : > { %1831 = vmax.xlane.f32.xlu0 %v1830_v8  ;;  %v5157_v17 = vpop.f32.mrb[34].mxu1 }
 0x23f   : > { %v5159_v23 = vpop.f32.mrb[35].mxu1  ;;  %v3849_v28 = vpop.f32.mrb[60].mxu0  ;;  %4046 = vmatpush1.bf16.msra.mxu0 %v4045_v20 }
 0x240   : > { %v1833_v7 = vmax.f32 %v5157_v17, %v5159_v23  ;;  %v1361_v63 = vpop.f32.mrb[61].mxu0  ;;  %4047 = vmatprep.subr.bf16.mxu0 %v4424_v62 }
 0x241   : > { %v4048_v5 = vpack.c.bf16 %v3849_v28, %v1361_v63 }
 0x242   : > { %1834 = vmax.xlane.f32.xlu0 %v1833_v7  ;;  %v5164_v25 = vpop.f32.mrb[36].mxu1 }
 0x243   : > { %v5166_v33 = vpop.f32.mrb[37].mxu1  ;;  %v3852_v3 = vpop.f32.mrb[62].mxu0  ;;  %4049 = vmatpush1.bf16.msra.mxu0 %v4048_v5 }
 0x244   : > { %v1836_v38 = vmax.f32 %v5164_v25, %v5166_v33  ;;  %v1371_v24 = vpop.f32.mrb[63].mxu0  ;;  %4050 = vmatprep.subr.bf16.mxu0 %v4424_v62 }
 0x245   : > { %v4051_v26 = vpack.c.bf16 %v3852_v3, %v1371_v24 }
 0x246   : > { %1837 = vmax.xlane.f32.xlu1 %v1836_v38  ;;  %v5171_v39 = vpop.f32.mrb[38].mxu1 }
 0x247   : > { %v5173_v43 = vpop.f32.mrb[39].mxu1  ;;  %4052 = vmatpush1.bf16.msra.mxu0 %v4051_v26 }
 0x248   : > { %v1839_v46 = vmax.f32 %v5171_v39, %v5173_v43 }
 0x24a   : > { %1840 = vmax.xlane.f32.xlu1 %v1839_v46  ;;  %v5178_v47 = vpop.f32.mrb[40].mxu1 }
 0x24b   : > { %v5180_v50 = vpop.f32.mrb[41].mxu1 }
 0x24c   : > { %v1842_v27 = vmax.f32 %v5178_v47, %v5180_v50 }
 0x24e   : > { %1843 = vmax.xlane.f32.xlu0 %v1842_v27  ;;  %v5185_v55 = vpop.f32.mrb[42].mxu1 }
 0x24f   : > { %v5187_v15 = vpop.f32.mrb[43].mxu1 }
 0x250   : > { %v1845_v4 = vmax.f32 %v5185_v55, %v5187_v15 }
 0x252   : > { %1846 = vmax.xlane.f32.xlu1 %v1845_v4  ;;  %v5191_v51 = vpop.f32.mrb[44].mxu1 }
 0x253   : > { %v5194_v42 = vpop.f32.mrb[45].mxu1 }
 0x254   : > { %v1848_v59 = vmax.f32 %v5191_v51, %v5194_v42 }
 0x256   : > { %1849 = vmax.xlane.f32.xlu0 %v1848_v59  ;;  %v5198_v10 = vpop.f32.mrb[46].mxu1 }
 0x257   : > { %v5201_v22 = vpop.f32.mrb[47].mxu1 }
 0x258   : > { %v1851_v12 = vmax.f32 %v5198_v10, %v5201_v22 }
 0x25a   : > { %1852 = vmax.xlane.f32.xlu1 %v1851_v12  ;;  %v5205_v2 = vpop.f32.mrb[48].mxu1 }
 0x25b   : > { %v5207_v30 = vpop.f32.mrb[49].mxu1 }
 0x25c   : > { %v1854_v29 = vmax.f32 %v5205_v2, %v5207_v30 }
 0x25e   : > { %1855 = vmax.xlane.f32.xlu0 %v1854_v29  ;;  %v5211_v32 = vpop.f32.mrb[50].mxu1 }
 0x25f   : > { %v5213_v34 = vpop.f32.mrb[51].mxu1 }
 0x260   : > { %v1857_v62 = vmax.f32 %v5211_v32, %v5213_v34 }
 0x262   : > { %1858 = vmax.xlane.f32.xlu1 %v1857_v62  ;;  %v5217_v35 = vpop.f32.mrb[52].mxu1 }
 0x263   : > { %v5219_v36 = vpop.f32.mrb[53].mxu1 }
 0x264   : > { %v1860_v37 = vmax.f32 %v5217_v35, %v5219_v36 }
 0x266   : > { %1861 = vmax.xlane.f32.xlu0 %v1860_v37  ;;  %v5223_v40 = vpop.f32.mrb[54].mxu1 }
 0x267   : > { %v5225_v41 = vpop.f32.mrb[55].mxu1 }
 0x268   : > { %v1863_v44 = vmax.f32 %v5223_v40, %v5225_v41 }
 0x26a   : > { %1864 = vmax.xlane.f32.xlu1 %v1863_v44  ;;  %v5229_v45 = vpop.f32.mrb[56].mxu1 }
 0x26b   : > { %v5231_v48 = vpop.f32.mrb[57].mxu1 }
 0x26c   : > { %v1866_v49 = vmax.f32 %v5229_v45, %v5231_v48 }
 0x26e   : > { %1867 = vmax.xlane.f32.xlu0 %v1866_v49  ;;  %v5235_v52 = vpop.f32.mrb[58].mxu1 }
 0x26f   : > { %v5237_v53 = vpop.f32.mrb[59].mxu1 }
 0x270   : > { %v1869_v56 = vmax.f32 %v5235_v52, %v5237_v53 }
 0x272   : > { %1870 = vmax.xlane.f32.xlu1 %v1869_v56  ;;  %v5241_v60 = vpop.f32.mrb[60].mxu1 }
 0x273   : > { %v5243_v61 = vpop.f32.mrb[61].mxu1 }
 0x274   : > { %v1872_v1 = vmax.f32 %v5241_v60, %v5243_v61 }
 0x276   : > { %1873 = vmax.xlane.f32.xlu0 %v1872_v1  ;;  %v5247_v8 = vpop.f32.mrb[62].mxu1 }
 0x277   : > { %v5249_v9 = vpop.f32.mrb[63].mxu1 }
 0x278   : > { %v1875_v13 = vmax.f32 %v5247_v8, %v5249_v9 }
 0x27a   : > { %1876 = vmax.xlane.f32.xlu1 %v1875_v13  ;;  %v5253_v14 = vpop.f32.mrb[64].mxu1 }
 0x27b   : > { %v5255_v18 = vpop.f32.mrb[65].mxu1 }
 0x27c   : > { %v1878_v21 = vmax.f32 %v5253_v14, %v5255_v18 }
 0x27e   : > { %1879 = vmax.xlane.f32.xlu0 %v1878_v21  ;;  %v5259_v6 = vpop.f32.mrb[66].mxu1 }
 0x27f   : > { %v5261_v7 = vpop.f32.mrb[67].mxu1 }
 0x280   : > { %v1881_v11 = vmax.f32 %v5259_v6, %v5261_v7 }
 0x282   : > { %1882 = vmax.xlane.f32.xlu1 %v1881_v11  ;;  %v5265_v16 = vpop.f32.mrb[68].mxu1 }
 0x283   : > { %v5267_v19 = vpop.f32.mrb[69].mxu1 }
 0x284   : > { %v1884_v31 = vmax.f32 %v5265_v16, %v5267_v19 }
 0x286   : > { %1885 = vmax.xlane.f32.xlu0 %v1884_v31  ;;  %v5271_v38 = vpop.f32.mrb[70].mxu1 }
 0x287   : > { %v5273_v46 = vpop.f32.mrb[71].mxu1 }
 0x288   : > { %v1887_v27 = vmax.f32 %v5271_v38, %v5273_v46 }
 0x28a   : > { %1888 = vmax.xlane.f32.xlu1 %v1887_v27  ;;  %v5277_v54 = vpop.f32.mrb[72].mxu1 }
 0x28b   : > { %v5279_v58 = vpop.f32.mrb[73].mxu1 }
 0x28c   : > { %v1890_v20 = vmax.f32 %v5277_v54, %v5279_v58 }
 0x28e   : > { %1891 = vmax.xlane.f32.xlu0 %v1890_v20  ;;  %v5283_v4 = vpop.f32.mrb[74].mxu1 }
 0x28f   : > { %v5285_v28 = vpop.f32.mrb[75].mxu1 }
 0x290   : > { %v1893_v63 = vmax.f32 %v5283_v4, %v5285_v28 }
 0x292   : > { %1894 = vmax.xlane.f32.xlu1 %v1893_v63  ;;  %v5289_v5 = vpop.f32.mrb[76].mxu1 }
 0x293   : > { %v5291_v59 = vpop.f32.mrb[77].mxu1 }
 0x294   : > { %v1896_v3 = vmax.f32 %v5289_v5, %v5291_v59 }
 0x296   : > { %1897 = vmax.xlane.f32.xlu0 %v1896_v3  ;;  %v5295_v24 = vpop.f32.mrb[78].mxu1 }
 0x297   : > { %v5297_v26 = vpop.f32.mrb[79].mxu1 }
 0x298   : > { %v1899_v12 = vmax.f32 %v5295_v24, %v5297_v26 }
 0x29a   : > { %1900 = vmax.xlane.f32.xlu1 %v1899_v12  ;;  %v5301_v29 = vpop.f32.mrb[80].mxu1 }
 0x29b   : > { %v5303_v62 = vpop.f32.mrb[81].mxu1 }
 0x29c   : > { %v1902_v37 = vmax.f32 %v5301_v29, %v5303_v62 }
 0x29e   : > { %1903 = vmax.xlane.f32.xlu0 %v1902_v37  ;;  %v5307_v44 = vpop.f32.mrb[82].mxu1 }
 0x29f   : > { %5802 = vst [vmem:[#allocation12_spill] sm:$0xff] %v5307_v44  ;;  %v5309_v49 = vpop.f32.mrb[83].mxu1 }
 0x2a0   : > { %5803 = vst [vmem:[#allocation14_spill] sm:$0xff] %v5309_v49  ;;  %v1905_v56 = vmax.f32 %v5307_v44, %v5309_v49 }
 0x2a2   : > { %1906 = vmax.xlane.f32.xlu1 %v1905_v56  ;;  %v5313_v1 = vpop.f32.mrb[84].mxu1 }
 0x2a3   : > { %5804 = vst [vmem:[#allocation13_spill] sm:$0xff] %v5313_v1  ;;  %v5315_v13 = vpop.f32.mrb[85].mxu1 }
 0x2a4   : > { %5805 = vst [vmem:[#allocation16_spill] sm:$0xff] %v5315_v13  ;;  %v1908_v21 = vmax.f32 %v5313_v1, %v5315_v13 }
 0x2a6   : > { %1909 = vmax.xlane.f32.xlu0 %v1908_v21  ;;  %v5319_v11 = vpop.f32.mrb[86].mxu1 }
 0x2a7   : > { %5806 = vst [vmem:[#allocation15_spill] sm:$0xff] %v5319_v11  ;;  %v5321_v31 = vpop.f32.mrb[87].mxu1 }
 0x2a8   : > { %5807 = vst [vmem:[#allocation18_spill] sm:$0xff] %v5321_v31  ;;  %v1911_v27 = vmax.f32 %v5319_v11, %v5321_v31 }
 0x2aa   : > { %1912 = vmax.xlane.f32.xlu1 %v1911_v27  ;;  %v5325_v20 = vpop.f32.mrb[88].mxu1 }
 0x2ab   : > { %5808 = vst [vmem:[#allocation17_spill] sm:$0xff] %v5325_v20  ;;  %v5327_v63 = vpop.f32.mrb[89].mxu1 }
 0x2ac   : > { %5809 = vst [vmem:[#allocation20_spill] sm:$0xff] %v5327_v63  ;;  %v1914_v3 = vmax.f32 %v5325_v20, %v5327_v63 }
 0x2ae   : > { %1915 = vmax.xlane.f32.xlu0 %v1914_v3  ;;  %v5331_v12 = vpop.f32.mrb[90].mxu1 }
 0x2af   : > { %5810 = vst [vmem:[#allocation19_spill] sm:$0xff] %v5331_v12  ;;  %v5333_v37 = vpop.f32.mrb[91].mxu1 }
 0x2b0   : > { %5811 = vst [vmem:[#allocation22_spill] sm:$0xff] %v5333_v37  ;;  %v1917_v56 = vmax.f32 %v5331_v12, %v5333_v37 }
 0x2b2   : > { %1918 = vmax.xlane.f32.xlu1 %v1917_v56  ;;  %v5337_v21 = vpop.f32.mrb[92].mxu1 }
 0x2b3   : > { %5812 = vst [vmem:[#allocation21_spill] sm:$0xff] %v5337_v21  ;;  %v5339_v31 = vpop.f32.mrb[93].mxu1 }
 0x2b4   : > { %5813 = vst [vmem:[#allocation23_spill] sm:$0xff] %v5339_v31  ;;  %v1920_v27 = vmax.f32 %v5337_v21, %v5339_v31 }
 0x2b6   : > { %1921 = vmax.xlane.f32.xlu0 %v1920_v27  ;;  %v5343_v11 = vpop.f32.mrb[94].mxu1 }
 0x2b7   : > { %v5345_v63 = vpop.f32.mrb[95].mxu1 }
 0x2b8   : > { %5814 = vst [vmem:[#allocation24_spill] sm:$0xff] %v5345_v63  ;;  %v1923_v3 = vmax.f32 %v5343_v11, %v5345_v63 }
 0x2ba   : > { %1924 = vmax.xlane.f32.xlu1 %v1923_v3 }
 0x2cb   : > { %v1832_v20 = vpop.xlane.xlu0 %1831 }
 0x2cc   : > { %v1926_v37 = vsub.f32 %v5150_v57, %v1832_v20  ;;  %v1927_v56 = vsub.f32 %v5152_v0, %v1832_v20 }
 0x2ce   : > { %v1990_v12 = vmul.f32 1.442695, %v1926_v37  ;;  %v1992_v13 = vmul.f32 1.442695, %v1927_v56 }
 0x2cf   : > { %v1835_v1 = vpop.xlane.xlu0 %1834 }
 0x2d0   : > { %4136 = vpow2.f32 %v1990_v12  ;;  %v1928_v31 = vsub.f32 %v5157_v17, %v1835_v1  ;;  %v1929_v27 = vsub.f32 %v5159_v23, %v1835_v1 }
 0x2d1   : > { %4138 = vpow2.f32 %v1992_v13 }
 0x2d2   : > { %v1994_v21 = vmul.f32 1.442695, %v1928_v31  ;;  %v1996_v49 = vmul.f32 1.442695, %v1929_v27 }
 0x2d3   : > { %v1838_v44 = vpop.xlane.xlu1 %1837 }
 0x2d4   : > { %4140 = vpow2.f32 %v1994_v21  ;;  %v1930_v3 = vsub.f32 %v5164_v25, %v1838_v44  ;;  %v1931_v63 = vsub.f32 %v5166_v33, %v1838_v44 }
 0x2d5   : > { %4142 = vpow2.f32 %v1996_v49 }
 0x2d6   : > { %v1998_v57 = vmul.f32 1.442695, %v1930_v3  ;;  %v2000_v0 = vmul.f32 1.442695, %v1931_v63 }
 0x2d7   : > { %v1841_v20 = vpop.xlane.xlu1 %1840 }
 0x2d8   : > { %4144 = vpow2.f32 %v1998_v57  ;;  %v1932_v12 = vsub.f32 %v5171_v39, %v1841_v20  ;;  %v1933_v17 = vsub.f32 %v5173_v43, %v1841_v20 }
 0x2d9   : > { %4146 = vpow2.f32 %v2000_v0 }
 0x2da   : > { %v4137_v23 = vpop.eup %4136  ;;  %v2002_v1 = vmul.f32 1.442695, %v1932_v12  ;;  %v2004_v13 = vmul.f32 1.442695, %v1933_v17 }
 0x2db   : > { %v4139_v31 = vpop.eup %4138  ;;  %v1844_v37 = vpop.xlane.xlu0 %1843 }
 0x2dc   : > { %4148 = vpow2.f32 %v2002_v1  ;;  %2278 = vmatprep.mubr.f32.mxu0 %v4139_v31  ;;  %v1934_v25 = vsub.f32 %v5178_v47, %v1844_v37  ;;  %v1935_v33 = vsub.f32 %v5180_v50, %v1844_v37  ;;  %v2118_v44 = vadd.f32 %v4139_v31, %v4137_v23 }
 0x2dd   : > { %4150 = vpow2.f32 %v2004_v13  ;;  %2279 = vmatmul.mubr.f32.vlgmr.msra.gmra.mrb[64].mxu0 %v4137_v23 }
 0x2de   : > { %v4141_v49 = vpop.eup %4140  ;;  %v2006_v63 = vmul.f32 1.442695, %v1934_v25  ;;  %v2008_v39 = vmul.f32 1.442695, %v1935_v33  ;;  %2119 = vadd.xlane.f32.xlu0 %v2118_v44 }
 0x2df   : > { %v4143_v43 = vpop.eup %4142  ;;  %v1847_v21 = vpop.xlane.xlu1 %1846 }
 0x2e0   : > { %4152 = vpow2.f32 %v2006_v63  ;;  %v1936_v56 = vsub.f32 %v5185_v55, %v1847_v21  ;;  %v1937_v27 = vsub.f32 %v5187_v15, %v1847_v21  ;;  %2283 = vmatprep.mubr.f32.mxu0 %v4143_v43  ;;  %v2121_v3 = vadd.f32 %v4143_v43, %v4141_v49 }
 0x2e1   : > { %4154 = vpow2.f32 %v2008_v39  ;;  %2284 = vmatmul.mubr.f32.gmra.mrb[66].mxu0 %v4141_v49 }
 0x2e2   : > { %v4145_v47 = vpop.eup %4144  ;;  %v2010_v50 = vmul.f32 1.442695, %v1936_v56  ;;  %v2012_v57 = vmul.f32 1.442695, %v1937_v27  ;;  %2122 = vadd.xlane.f32.xlu1 %v2121_v3 }
 0x2e3   : > { %v4147_v0 = vpop.eup %4146  ;;  %v1850_v20 = vpop.xlane.xlu0 %1849 }
 0x2e4   : > { %4156 = vpow2.f32 %v2010_v50  ;;  %v1938_v12 = vsub.f32 %v5191_v51, %v1850_v20  ;;  %v1939_v17 = vsub.f32 %v5194_v42, %v1850_v20  ;;  %2288 = vmatprep.mubr.f32.mxu0 %v4147_v0  ;;  %v2124_v23 = vadd.f32 %v4147_v0, %v4145_v47 }
 0x2e5   : > { %4158 = vpow2.f32 %v2012_v57  ;;  %2289 = vmatmul.mubr.f32.gmra.mrb[68].mxu0 %v4145_v47 }
 0x2e6   : > { %v4149_v55 = vpop.eup %4148  ;;  %v2014_v15 = vmul.f32 1.442695, %v1938_v12  ;;  %v2016_v1 = vmul.f32 1.442695, %v1939_v17  ;;  %2125 = vadd.xlane.f32.xlu0 %v2124_v23 }
 0x2e7   : > { %v4151_v13 = vpop.eup %4150  ;;  %v1853_v31 = vpop.xlane.xlu1 %1852 }
 0x2e8   : > { %4160 = vpow2.f32 %v2014_v15  ;;  %v1940_v37 = vsub.f32 %v5198_v10, %v1853_v31  ;;  %v1941_v25 = vsub.f32 %v5201_v22, %v1853_v31  ;;  %2293 = vmatprep.mubr.f32.mxu0 %v4151_v13  ;;  %v2127_v33 = vadd.f32 %v4151_v13, %v4149_v55 }
 0x2e9   : > { %4162 = vpow2.f32 %v2016_v1  ;;  %2294 = vmatmul.mubr.f32.gmra.mrb[70].mxu0 %v4149_v55 }
 0x2ea   : > { %v4153_v51 = vpop.eup %4152  ;;  %v2018_v42 = vmul.f32 1.442695, %v1940_v37  ;;  %v2020_v44 = vmul.f32 1.442695, %v1941_v25  ;;  %2128 = vadd.xlane.f32.xlu1 %v2127_v33 }
 0x2eb   : > { %v4155_v49 = vpop.eup %4154  ;;  %v1856_v63 = vpop.xlane.xlu0 %1855 }
 0x2ec   : > { %4164 = vpow2.f32 %v2018_v42  ;;  %v1942_v39 = vsub.f32 %v5205_v2, %v1856_v63  ;;  %v1943_v43 = vsub.f32 %v5207_v30, %v1856_v63  ;;  %2298 = vmatprep.mubr.f32.mxu0 %v4155_v49  ;;  %v2130_v21 = vadd.f32 %v4155_v49, %v4153_v51 }
 0x2ed   : > { %4166 = vpow2.f32 %v2020_v44  ;;  %2299 = vmatmul.mubr.f32.gmra.mrb[72].mxu0 %v4153_v51 }
 0x2ee   : > { %v4157_v10 = vpop.eup %4156  ;;  %v2022_v22 = vmul.f32 1.442695, %v1942_v39  ;;  %v2024_v56 = vmul.f32 1.442695, %v1943_v43  ;;  %2131 = vadd.xlane.f32.xlu0 %v2130_v21 }
 0x2ef   : > { %v4159_v27 = vpop.eup %4158  ;;  %v1859_v3 = vpop.xlane.xlu1 %1858 }
 0x2f0   : > { %4168 = vpow2.f32 %v2022_v22  ;;  %v1944_v47 = vsub.f32 %v5211_v32, %v1859_v3  ;;  %v1945_v50 = vsub.f32 %v5213_v34, %v1859_v3  ;;  %2303 = vmatprep.mubr.f32.mxu0 %v4159_v27  ;;  %v2133_v57 = vadd.f32 %v4159_v27, %v4157_v10 }
 0x2f1   : > { %4170 = vpow2.f32 %v2024_v56  ;;  %2304 = vmatmul.mubr.f32.gmra.mrb[74].mxu0 %v4157_v10 }
 0x2f2   : > { %v4161_v2 = vpop.eup %4160  ;;  %v2026_v30 = vmul.f32 1.442695, %v1944_v47  ;;  %v2028_v0 = vmul.f32 1.442695, %v1945_v50  ;;  %2134 = vadd.xlane.f32.xlu1 %v2133_v57 }
 0x2f3   : > { %v4163_v20 = vpop.eup %4162  ;;  %v1862_v12 = vpop.xlane.xlu0 %1861 }
 0x2f4   : > { %4172 = vpow2.f32 %v2026_v30  ;;  %v1946_v17 = vsub.f32 %v5217_v35, %v1862_v12  ;;  %v1947_v23 = vsub.f32 %v5219_v36, %v1862_v12  ;;  %2308 = vmatprep.mubr.f32.mxu0 %v4163_v20  ;;  %v2136_v55 = vadd.f32 %v4163_v20, %v4161_v2 }
 0x2f5   : > { %4174 = vpow2.f32 %v2028_v0  ;;  %2309 = vmatmul.mubr.f32.gmra.mrb[76].mxu0 %v4161_v2 }
 0x2f6   : > { %v4165_v32 = vpop.eup %4164  ;;  %v2030_v34 = vmul.f32 1.442695, %v1946_v17  ;;  %v2032_v15 = vmul.f32 1.442695, %v1947_v23  ;;  %2137 = vadd.xlane.f32.xlu0 %v2136_v55 }
 0x2f7   : > { %v4167_v1 = vpop.eup %4166  ;;  %v1865_v13 = vpop.xlane.xlu1 %1864 }
 0x2f8   : > { %4176 = vpow2.f32 %v2030_v34  ;;  %v1948_v31 = vsub.f32 %v5223_v40, %v1865_v13  ;;  %v1949_v37 = vsub.f32 %v5225_v41, %v1865_v13  ;;  %2313 = vmatprep.mubr.f32.mxu0 %v4167_v1  ;;  %v2139_v25 = vadd.f32 %v4167_v1, %v4165_v32 }
 0x2f9   : > { %4178 = vpow2.f32 %v2032_v15  ;;  %2314 = vmatmul.mubr.f32.gmra.mrb[78].mxu0 %v4165_v32 }
 0x2fa   : > { %v4169_v35 = vpop.eup %4168  ;;  %v2034_v36 = vmul.f32 1.442695, %v1948_v31  ;;  %v2036_v33 = vmul.f32 1.442695, %v1949_v37  ;;  %2140 = vadd.xlane.f32.xlu1 %v2139_v25 }
 0x2fb   : > { %v4171_v51 = vpop.eup %4170  ;;  %v1868_v42 = vpop.xlane.xlu0 %1867 }
 0x2fc   : > { %4180 = vpow2.f32 %v2034_v36  ;;  %v1950_v44 = vsub.f32 %v5229_v45, %v1868_v42  ;;  %v1951_v49 = vsub.f32 %v5231_v48, %v1868_v42  ;;  %2318 = vmatprep.mubr.f32.mxu0 %v4171_v51  ;;  %v2142_v63 = vadd.f32 %v4171_v51, %v4169_v35 }
 0x2fd   : > { %4182 = vpow2.f32 %v2036_v33  ;;  %2319 = vmatmul.mubr.f32.gmra.mrb[80].mxu0 %v4169_v35 }
 0x2fe   : > { %v4173_v40 = vpop.eup %4172  ;;  %v2038_v41 = vmul.f32 1.442695, %v1950_v44  ;;  %v2040_v39 = vmul.f32 1.442695, %v1951_v49  ;;  %2143 = vadd.xlane.f32.xlu0 %v2142_v63 }
 0x2ff   : > { %v4175_v43 = vpop.eup %4174  ;;  %v1871_v21 = vpop.xlane.xlu1 %1870 }
 0x300   : > { %4184 = vpow2.f32 %v2038_v41  ;;  %v1952_v10 = vsub.f32 %v5235_v52, %v1871_v21  ;;  %v1953_v22 = vsub.f32 %v5237_v53, %v1871_v21  ;;  %2323 = vmatprep.mubr.f32.mxu0 %v4175_v43  ;;  %v2145_v56 = vadd.f32 %v4175_v43, %v4173_v40 }
 0x301   : > { %4186 = vpow2.f32 %v2040_v39  ;;  %2324 = vmatmul.mubr.f32.gmra.mrb[82].mxu0 %v4173_v40 }
 0x302   : > { %v4177_v45 = vpop.eup %4176  ;;  %v2042_v48 = vmul.f32 1.442695, %v1952_v10  ;;  %v2044_v27 = vmul.f32 1.442695, %v1953_v22  ;;  %2146 = vadd.xlane.f32.xlu1 %v2145_v56 }
 0x303   : > { %v4179_v3 = vpop.eup %4178  ;;  %v1874_v47 = vpop.xlane.xlu0 %1873 }
 0x304   : > { %4188 = vpow2.f32 %v2042_v48  ;;  %v1954_v50 = vsub.f32 %v5241_v60, %v1874_v47  ;;  %v1955_v57 = vsub.f32 %v5243_v61, %v1874_v47  ;;  %2328 = vmatprep.mubr.f32.mxu0 %v4179_v3  ;;  %v2148_v2 = vadd.f32 %v4179_v3, %v4177_v45 }
 0x305   : > { %4190 = vpow2.f32 %v2044_v27  ;;  %2329 = vmatmul.mubr.f32.gmra.mrb[84].mxu0 %v4177_v45 }
 0x306   : > { %v4181_v52 = vpop.eup %4180  ;;  %v2046_v53 = vmul.f32 1.442695, %v1954_v50  ;;  %v2048_v30 = vmul.f32 1.442695, %v1955_v57  ;;  %2149 = vadd.xlane.f32.xlu0 %v2148_v2 }
 0x307   : > { %v4183_v0 = vpop.eup %4182  ;;  %v1877_v20 = vpop.xlane.xlu1 %1876 }
 0x308   : > { %4192 = vpow2.f32 %v2046_v53  ;;  %v1956_v12 = vsub.f32 %v5247_v8, %v1877_v20  ;;  %v1957_v17 = vsub.f32 %v5249_v9, %v1877_v20  ;;  %2333 = vmatprep.mubr.f32.mxu0 %v4183_v0  ;;  %v2151_v23 = vadd.f32 %v4183_v0, %v4181_v52 }
 0x309   : > { %4194 = vpow2.f32 %v2048_v30  ;;  %2334 = vmatmul.mubr.f32.gmra.mrb[86].mxu0 %v4181_v52 }
 0x30a   : > { %v4185_v60 = vpop.eup %4184  ;;  %v2050_v61 = vmul.f32 1.442695, %v1956_v12  ;;  %v2052_v55 = vmul.f32 1.442695, %v1957_v17  ;;  %2152 = vadd.xlane.f32.xlu1 %v2151_v23 }
 0x30b   : > { %v4187_v32 = vpop.eup %4186  ;;  %v1880_v34 = vpop.xlane.xlu0 %1879 }
 0x30c   : > { %4196 = vpow2.f32 %v2050_v61  ;;  %v1958_v15 = vsub.f32 %v5253_v14, %v1880_v34  ;;  %v1959_v1 = vsub.f32 %v5255_v18, %v1880_v34  ;;  %2338 = vmatprep.mubr.f32.mxu0 %v4187_v32  ;;  %v2154_v13 = vadd.f32 %v4187_v32, %v4185_v60 }
 0x30d   : > { %4198 = vpow2.f32 %v2052_v55  ;;  %2339 = vmatmul.mubr.f32.gmra.mrb[88].mxu0 %v4185_v60 }
 0x30e   : > { %v4189_v8 = vpop.eup %4188  ;;  %v2054_v9 = vmul.f32 1.442695, %v1958_v15  ;;  %v2056_v31 = vmul.f32 1.442695, %v1959_v1  ;;  %2155 = vadd.xlane.f32.xlu0 %v2154_v13 }
 0x30f   : > { %v4191_v37 = vpop.eup %4190  ;;  %v1883_v25 = vpop.xlane.xlu1 %1882 }
 0x310   : > { %4200 = vpow2.f32 %v2054_v9  ;;  %v1960_v35 = vsub.f32 %v5259_v6, %v1883_v25  ;;  %v1961_v36 = vsub.f32 %v5261_v7, %v1883_v25  ;;  %2343 = vmatprep.mubr.f32.mxu0 %v4191_v37  ;;  %v2157_v33 = vadd.f32 %v4191_v37, %v4189_v8 }
 0x311   : > { %4202 = vpow2.f32 %v2056_v31  ;;  %2344 = vmatmul.mubr.f32.gmra.mrb[90].mxu0 %v4189_v8 }
 0x312   : > { %v4193_v14 = vpop.eup %4192  ;;  %v2058_v18 = vmul.f32 1.442695, %v1960_v35  ;;  %v2060_v51 = vmul.f32 1.442695, %v1961_v36  ;;  %2158 = vadd.xlane.f32.xlu1 %v2157_v33 }
 0x313   : > { %v4195_v42 = vpop.eup %4194  ;;  %v1886_v44 = vpop.xlane.xlu0 %1885 }
 0x314   : > { %4204 = vpow2.f32 %v2058_v18  ;;  %v1962_v49 = vsub.f32 %v5265_v16, %v1886_v44  ;;  %v1963_v63 = vsub.f32 %v5267_v19, %v1886_v44  ;;  %2348 = vmatprep.mubr.f32.mxu0 %v4195_v42  ;;  %v2160_v40 = vadd.f32 %v4195_v42, %v4193_v14 }
 0x315   : > { %4206 = vpow2.f32 %v2060_v51  ;;  %2349 = vmatmul.mubr.f32.gmra.mrb[92].mxu0 %v4193_v14  ;;  %v5815_v14 = vld [vmem:[#allocation12_spill] sm:$0xff]  ;;  %v5816_v51 = vld [vmem:[#allocation14_spill] sm:$0xff] }
 0x316   : > { %v4197_v6 = vpop.eup %4196  ;;  %v2062_v7 = vmul.f32 1.442695, %v1962_v49  ;;  %v2064_v41 = vmul.f32 1.442695, %v1963_v63  ;;  %2161 = vadd.xlane.f32.xlu0 %v2160_v40 }
 0x317   : > { %v4199_v39 = vpop.eup %4198  ;;  %v1889_v43 = vpop.xlane.xlu1 %1888 }
 0x318   : > { %4208 = vpow2.f32 %v2062_v7  ;;  %v1964_v21 = vsub.f32 %v5271_v38, %v1889_v43  ;;  %v1965_v10 = vsub.f32 %v5273_v46, %v1889_v43  ;;  %2353 = vmatprep.mubr.f32.mxu0 %v4199_v39  ;;  %v2163_v22 = vadd.f32 %v4199_v39, %v4197_v6 }
 0x319   : > { %4210 = vpow2.f32 %v2064_v41  ;;  %2354 = vmatmul.mubr.f32.gmra.mrb[94].mxu0 %v4197_v6  ;;  %v5817_v6 = vld [vmem:[#allocation13_spill] sm:$0xff]  ;;  %v5818_v41 = vld [vmem:[#allocation16_spill] sm:$0xff] }
 0x31a   : > { %v4201_v16 = vpop.eup %4200  ;;  %v2066_v19 = vmul.f32 1.442695, %v1964_v21  ;;  %v2068_v56 = vmul.f32 1.442695, %v1965_v10  ;;  %2164 = vadd.xlane.f32.xlu1 %v2163_v22 }
 0x31b   : > { %v4203_v45 = vpop.eup %4202  ;;  %v1892_v48 = vpop.xlane.xlu0 %1891 }
 0x31c   : > { %4212 = vpow2.f32 %v2066_v19  ;;  %v1966_v27 = vsub.f32 %v5277_v54, %v1892_v48  ;;  %v1967_v3 = vsub.f32 %v5279_v58, %v1892_v48  ;;  %2358 = vmatprep.mubr.f32.mxu0 %v4203_v45  ;;  %v2166_v47 = vadd.f32 %v4203_v45, %v4201_v16  ;;  %v5820_v48 = vld [vmem:[#allocation18_spill] sm:$0xff] }
 0x31d   : > { %4214 = vpow2.f32 %v2068_v56  ;;  %2359 = vmatmul.mubr.f32.gmra.mrb[96].mxu0 %v4201_v16  ;;  %v5819_v56 = vld [vmem:[#allocation15_spill] sm:$0xff] }
 0x31e   : > { %v4205_v38 = vpop.eup %4204  ;;  %v2070_v46 = vmul.f32 1.442695, %v1966_v27  ;;  %v2072_v50 = vmul.f32 1.442695, %v1967_v3  ;;  %2167 = vadd.xlane.f32.xlu0 %v2166_v47 }
 0x31f   : > { %v4207_v57 = vpop.eup %4206  ;;  %v1895_v2 = vpop.xlane.xlu1 %1894 }
 0x320   : > { %4216 = vpow2.f32 %v2070_v46  ;;  %v1968_v52 = vsub.f32 %v5283_v4, %v1895_v2  ;;  %v1969_v53 = vsub.f32 %v5285_v28, %v1895_v2  ;;  %2363 = vmatprep.mubr.f32.mxu0 %v4207_v57  ;;  %v2169_v30 = vadd.f32 %v4207_v57, %v4205_v38  ;;  %v5821_v2 = vld [vmem:[#allocation17_spill] sm:$0xff] }
 0x321   : > { %4218 = vpow2.f32 %v2072_v50  ;;  %2364 = vmatmul.mubr.f32.gmra.mrb[98].mxu0 %v4205_v38 }
 0x322   : > { %v4209_v54 = vpop.eup %4208  ;;  %v2074_v58 = vmul.f32 1.442695, %v1968_v52  ;;  %v2076_v0 = vmul.f32 1.442695, %v1969_v53  ;;  %2170 = vadd.xlane.f32.xlu1 %v2169_v30  ;;  %v5822_v53 = vld [vmem:[#allocation20_spill] sm:$0xff] }
 0x323   : > { %v4211_v20 = vpop.eup %4210  ;;  %v1898_v12 = vpop.xlane.xlu0 %1897 }
 0x324   : > { %4220 = vpow2.f32 %v2074_v58  ;;  %v1970_v17 = vsub.f32 %v5289_v5, %v1898_v12  ;;  %v1971_v23 = vsub.f32 %v5291_v59, %v1898_v12  ;;  %2368 = vmatprep.mubr.f32.mxu0 %v4211_v20  ;;  %v2172_v60 = vadd.f32 %v4211_v20, %v4209_v54 }
 0x325   : > { %4222 = vpow2.f32 %v2076_v0  ;;  %2369 = vmatmul.mubr.f32.gmra.mrb[100].mxu0 %v4209_v54 }
 0x326   : > { %v4213_v4 = vpop.eup %4212  ;;  %v2078_v28 = vmul.f32 1.442695, %v1970_v17  ;;  %v2080_v61 = vmul.f32 1.442695, %v1971_v23  ;;  %2173 = vadd.xlane.f32.xlu0 %v2172_v60  ;;  %v5823_v23 = vld [vmem:[#allocation19_spill] sm:$0xff] }
 0x327   : > { %v4215_v55 = vpop.eup %4214  ;;  %v1901_v32 = vpop.xlane.xlu1 %1900 }
 0x328   : > { %4224 = vpow2.f32 %v2078_v28  ;;  %v1972_v34 = vsub.f32 %v5295_v24, %v1901_v32  ;;  %v1973_v15 = vsub.f32 %v5297_v26, %v1901_v32  ;;  %2373 = vmatprep.mubr.f32.mxu0 %v4215_v55  ;;  %v2175_v1 = vadd.f32 %v4215_v55, %v4213_v4 }
 0x329   : > { %4226 = vpow2.f32 %v2080_v61  ;;  %2374 = vmatmul.mubr.f32.gmra.mrb[102].mxu0 %v4213_v4  ;;  %v5824_v4 = vld [vmem:[#allocation22_spill] sm:$0xff] }
 0x32a   : > { %v4217_v5 = vpop.eup %4216  ;;  %v2082_v59 = vmul.f32 1.442695, %v1972_v34  ;;  %v2084_v13 = vmul.f32 1.442695, %v1973_v15  ;;  %2176 = vadd.xlane.f32.xlu1 %v2175_v1 }
 0x32b   : > { %v4219_v8 = vpop.eup %4218  ;;  %v1904_v9 = vpop.xlane.xlu0 %1903 }
 0x32c   : > { %4228 = vpow2.f32 %v2082_v59  ;;  %v1974_v31 = vsub.f32 %v5301_v29, %v1904_v9  ;;  %v1975_v37 = vsub.f32 %v5303_v62, %v1904_v9  ;;  %2378 = vmatprep.mubr.f32.mxu0 %v4219_v8  ;;  %v2178_v25 = vadd.f32 %v4219_v8, %v4217_v5 }
 0x32d   : > { %4230 = vpow2.f32 %v2084_v13  ;;  %2379 = vmatmul.mubr.f32.gmra.mrb[104].mxu0 %v4217_v5  ;;  %v5825_v5 = vld [vmem:[#allocation21_spill] sm:$0xff]  ;;  %v5826_v13 = vld [vmem:[#allocation23_spill] sm:$0xff] }
 0x32e   : > { %v4221_v24 = vpop.eup %4220  ;;  %v2086_v26 = vmul.f32 1.442695, %v1974_v31  ;;  %v2088_v35 = vmul.f32 1.442695, %v1975_v37  ;;  %2179 = vadd.xlane.f32.xlu0 %v2178_v25 }
 0x32f   : > { %v4223_v36 = vpop.eup %4222  ;;  %v1907_v33 = vpop.xlane.xlu1 %1906 }
 0x330   : > { %4232 = vpow2.f32 %v2086_v26  ;;  %v1976_v18 = vsub.f32 %v5815_v14, %v1907_v33  ;;  %v1977_v42 = vsub.f32 %v5816_v51, %v1907_v33  ;;  %2383 = vmatprep.mubr.f32.mxu0 %v4223_v36  ;;  %v2181_v44 = vadd.f32 %v4223_v36, %v4221_v24  ;;  %v5827_v36 = vld [vmem:[#allocation24_spill] sm:$0xff] }
 0x331   : > { %4234 = vpow2.f32 %v2088_v35  ;;  %2384 = vmatmul.mubr.f32.gmra.mrb[106].mxu0 %v4221_v24 }
 0x332   : > { %v4225_v29 = vpop.eup %4224  ;;  %v2090_v62 = vmul.f32 1.442695, %v1976_v18  ;;  %v2092_v49 = vmul.f32 1.442695, %v1977_v42  ;;  %2182 = vadd.xlane.f32.xlu1 %v2181_v44 }
 0x333   : > { %v4227_v63 = vpop.eup %4226  ;;  %v1910_v40 = vpop.xlane.xlu0 %1909 }
 0x334   : > { %4236 = vpow2.f32 %v2090_v62  ;;  %v1978_v7 = vsub.f32 %v5817_v6, %v1910_v40  ;;  %v1979_v39 = vsub.f32 %v5818_v41, %v1910_v40  ;;  %2388 = vmatprep.mubr.f32.mxu0 %v4227_v63  ;;  %v2184_v43 = vadd.f32 %v4227_v63, %v4225_v29 }
 0x335   : > { %4238 = vpow2.f32 %v2092_v49  ;;  %2389 = vmatmul.mubr.f32.gmra.mrb[108].mxu0 %v4225_v29 }
 0x336   : > { %v4229_v21 = vpop.eup %4228  ;;  %v2094_v10 = vmul.f32 1.442695, %v1978_v7  ;;  %v2096_v22 = vmul.f32 1.442695, %v1979_v39  ;;  %2185 = vadd.xlane.f32.xlu0 %v2184_v43 }
 0x337   : > { %v4231_v16 = vpop.eup %4230  ;;  %v1913_v19 = vpop.xlane.xlu1 %1912 }
 0x338   : > { %4240 = vpow2.f32 %v2094_v10  ;;  %v1980_v45 = vsub.f32 %v5819_v56, %v1913_v19  ;;  %v1981_v27 = vsub.f32 %v5820_v48, %v1913_v19  ;;  %2393 = vmatprep.mubr.f32.mxu0 %v4231_v16  ;;  %v2187_v3 = vadd.f32 %v4231_v16, %v4229_v21 }
 0x339   : > { %4242 = vpow2.f32 %v2096_v22  ;;  %2394 = vmatmul.mubr.f32.gmra.mrb[110].mxu0 %v4229_v21 }
 0x33a   : > { %v4233_v47 = vpop.eup %4232  ;;  %v2098_v38 = vmul.f32 1.442695, %v1980_v45  ;;  %v2100_v46 = vmul.f32 1.442695, %v1981_v27  ;;  %2188 = vadd.xlane.f32.xlu1 %v2187_v3 }
 0x33b   : > { %v4235_v50 = vpop.eup %4234  ;;  %v1916_v57 = vpop.xlane.xlu0 %1915 }
 0x33c   : > { %4244 = vpow2.f32 %v2098_v38  ;;  %v1982_v52 = vsub.f32 %v5821_v2, %v1916_v57  ;;  %v1983_v30 = vsub.f32 %v5822_v53, %v1916_v57  ;;  %2398 = vmatprep.mubr.f32.mxu0 %v4235_v50  ;;  %v2190_v54 = vadd.f32 %v4235_v50, %v4233_v47 }
 0x33d   : > { %4246 = vpow2.f32 %v2100_v46  ;;  %2399 = vmatmul.mubr.f32.gmra.mrb[112].mxu0 %v4233_v47 }
 0x33e   : > { %v4237_v58 = vpop.eup %4236  ;;  %v2102_v0 = vmul.f32 1.442695, %v1982_v52  ;;  %v2104_v20 = vmul.f32 1.442695, %v1983_v30  ;;  %2191 = vadd.xlane.f32.xlu0 %v2190_v54 }
 0x33f   : > { %v4239_v12 = vpop.eup %4238  ;;  %v1919_v17 = vpop.xlane.xlu1 %1918 }
 0x340   : > { %4248 = vpow2.f32 %v2102_v0  ;;  %v1984_v60 = vsub.f32 %v5823_v23, %v1919_v17  ;;  %v1985_v28 = vsub.f32 %v5824_v4, %v1919_v17  ;;  %2403 = vmatprep.mubr.f32.mxu0 %v4239_v12  ;;  %v2193_v61 = vadd.f32 %v4239_v12, %v4237_v58 }
 0x341   : > { %4250 = vpow2.f32 %v2104_v20  ;;  %2404 = vmatmul.mubr.f32.gmra.mrb[114].mxu0 %v4237_v58 }
 0x342   : > { %v4241_v55 = vpop.eup %4240  ;;  %v2106_v32 = vmul.f32 1.442695, %v1984_v60  ;;  %v2108_v34 = vmul.f32 1.442695, %v1985_v28  ;;  %2194 = vadd.xlane.f32.xlu1 %v2193_v61 }
 0x343   : > { %v4243_v15 = vpop.eup %4242  ;;  %v1922_v1 = vpop.xlane.xlu0 %1921 }
 0x344   : > { %4252 = vpow2.f32 %v2106_v32  ;;  %2408 = vmatprep.mubr.f32.mxu0 %v4243_v15  ;;  %v1986_v59 = vsub.f32 %v5825_v5, %v1922_v1  ;;  %v1987_v8 = vsub.f32 %v5826_v13, %v1922_v1  ;;  %v2196_v9 = vadd.f32 %v4243_v15, %v4241_v55 }
 0x345   : > { %4254 = vpow2.f32 %v2108_v34  ;;  %2409 = vmatmul.mubr.f32.gmra.mrb[116].mxu0 %v4241_v55 }
 0x346   : > { %v4245_v31 = vpop.eup %4244  ;;  %v2110_v37 = vmul.f32 1.442695, %v1986_v59  ;;  %v2112_v25 = vmul.f32 1.442695, %v1987_v8  ;;  %2197 = vadd.xlane.f32.xlu0 %v2196_v9 }
 0x347   : > { %v4247_v24 = vpop.eup %4246  ;;  %v1925_v26 = vpop.xlane.xlu1 %1924 }
 0x348   : > { %4256 = vpow2.f32 %v2110_v37  ;;  %2413 = vmatprep.mubr.f32.mxu0 %v4247_v24  ;;  %v1988_v35 = vsub.f32 %v5343_v11, %v1925_v26  ;;  %v1989_v33 = vsub.f32 %v5827_v36, %v1925_v26  ;;  %v2199_v14 = vadd.f32 %v4247_v24, %v4245_v31 }
 0x349   : > { %4258 = vpow2.f32 %v2112_v25  ;;  %2414 = vmatmul.mubr.f32.gmra.mrb[118].mxu0 %v4245_v31 }
 0x34a   : > { %v4249_v18 = vpop.eup %4248  ;;  %v2114_v51 = vmul.f32 1.442695, %v1988_v35  ;;  %v2116_v42 = vmul.f32 1.442695, %v1989_v33  ;;  %2200 = vadd.xlane.f32.xlu1 %v2199_v14 }
 0x34b   : > { %v4251_v44 = vpop.eup %4250 }
 0x34c   : > { %4260 = vpow2.f32 %v2114_v51  ;;  %2418 = vmatprep.mubr.f32.mxu0 %v4251_v44  ;;  %v2202_v29 = vadd.f32 %v4251_v44, %v4249_v18 }
 0x34d   : > { %4262 = vpow2.f32 %v2116_v42  ;;  %2419 = vmatmul.mubr.f32.gmra.mrb[120].mxu0 %v4249_v18 }
 0x34e   : > { %v4253_v62 = vpop.eup %4252  ;;  %2203 = vadd.xlane.f32.xlu0 %v2202_v29 }
 0x34f   : > { %v4255_v49 = vpop.eup %4254 }
 0x350   : > { %2423 = vmatprep.mubr.f32.mxu0 %v4255_v49  ;;  %v2205_v11 = vadd.f32 %v4255_v49, %v4253_v62 }
 0x351   : > { %2424 = vmatmul.mubr.f32.gmra.mrb[122].mxu0 %v4253_v62 }
 0x352   : > { %v4257_v63 = vpop.eup %4256  ;;  %2206 = vadd.xlane.f32.xlu1 %v2205_v11 }
 0x353   : > { %v4259_v40 = vpop.eup %4258 }
 0x354   : > { %2428 = vmatprep.mubr.f32.mxu0 %v4259_v40  ;;  %v2208_v6 = vadd.f32 %v4259_v40, %v4257_v63 }
 0x355   : > { %2429 = vmatmul.mubr.f32.gmra.mrb[124].mxu0 %v4257_v63 }
 0x356   : > { %v4261_v7 = vpop.eup %4260  ;;  %2209 = vadd.xlane.f32.xlu0 %v2208_v6 }
 0x357   : > { %v4263_v41 = vpop.eup %4262 }
 0x358   : > { %2433 = vmatprep.mubr.f32.mxu0 %v4263_v41  ;;  %v2211_v39 = vadd.f32 %v4263_v41, %v4261_v7 }
 0x359   : > { %2434 = vmatmul.mubr.f32.gmra.mrb[126].mxu0 %v4261_v7 }
 0x35a   : > { %2212 = vadd.xlane.f32.xlu1 %v2211_v39 }
 0x36b   : > { %v2120_v43 = vpop.xlane.xlu0 %2119 }
 0x36c   : > { %4264 = vrcp.f32 %v2120_v43 }
 0x36f   : > { %v2123_v21 = vpop.xlane.xlu1 %2122 }
 0x370   : > { %4266 = vrcp.f32 %v2123_v21 }
 0x373   : > { %v2126_v10 = vpop.xlane.xlu0 %2125 }
 0x374   : > { %4268 = vrcp.f32 %v2126_v10 }
 0x376   : > { %v4265_v16 = vpop.eup %4264 }
 0x377   : > { %v2129_v22 = vpop.xlane.xlu1 %2128 }
 0x378   : > { %4270 = vrcp.f32 %v2129_v22 }
 0x37a   : > { %v4267_v27 = vpop.eup %4266 }
 0x37b   : > { %v2132_v48 = vpop.xlane.xlu0 %2131 }
 0x37c   : > { %4272 = vrcp.f32 %v2132_v48 }
 0x37e   : > { %v4269_v50 = vpop.eup %4268 }
 0x37f   : > { %v2135_v46 = vpop.xlane.xlu1 %2134 }
 0x380   : > { %4274 = vrcp.f32 %v2135_v46 }
 0x382   : > { %v4271_v30 = vpop.eup %4270 }
 0x383   : > { %v2138_v53 = vpop.xlane.xlu0 %2137 }
 0x384   : > { %4276 = vrcp.f32 %v2138_v53 }
 0x386   : > { %v4273_v12 = vpop.eup %4272 }
 0x387   : > { %v2141_v20 = vpop.xlane.xlu1 %2140 }
 0x388   : > { %4278 = vrcp.f32 %v2141_v20 }
 0x38a   : > { %v4275_v28 = vpop.eup %4274 }
 0x38b   : > { %v2144_v4 = vpop.xlane.xlu0 %2143 }
 0x38c   : > { %4280 = vrcp.f32 %v2144_v4 }
 0x38e   : > { %v4277_v15 = vpop.eup %4276 }
 0x38f   : > { %v2147_v34 = vpop.xlane.xlu1 %2146 }
 0x390   : > { %4282 = vrcp.f32 %v2147_v34 }
 0x392   : > { %v4279_v8 = vpop.eup %4278 }
 0x393   : > { %v2150_v13 = vpop.xlane.xlu0 %2149 }
 0x394   : > { %4284 = vrcp.f32 %v2150_v13 }
 0x396   : > { %v4281_v24 = vpop.eup %4280 }
 0x397   : > { %v2153_v25 = vpop.xlane.xlu1 %2152 }
 0x398   : > { %4286 = vrcp.f32 %v2153_v25 }
 0x39a   : > { %v4283_v14 = vpop.eup %4282 }
 0x39b   : > { %v2156_v33 = vpop.xlane.xlu0 %2155 }
 0x39c   : > { %4288 = vrcp.f32 %v2156_v33 }
 0x39e   : > { %v4285_v29 = vpop.eup %4284 }
 0x39f   : > { %v2159_v44 = vpop.xlane.xlu1 %2158 }
 0x3a0   : > { %4290 = vrcp.f32 %v2159_v44 }
 0x3a2   : > { %v4287_v40 = vpop.eup %4286 }
 0x3a3   : > { %v2162_v63 = vpop.xlane.xlu0 %2161 }
 0x3a4   : > { %4292 = vrcp.f32 %v2162_v63 }
 0x3a6   : > { %v4289_v43 = vpop.eup %4288 }
 0x3a7   : > { %v2165_v39 = vpop.xlane.xlu1 %2164 }
 0x3a8   : > { %4294 = vrcp.f32 %v2165_v39 }
 0x3b0   : > { %v2280_v19 = vpop.f32.mrb[64].mxu0 }
 0x3b1   : > { %v5413_v56 = vmul.f32 %v4265_v16, %v2280_v19  ;;  %v2282_v45 = vpop.f32.mrb[65].mxu0  ;;  %v2168_v16 = vpop.xlane.xlu0 %2167 }
 0x3b2   : > { %v4291_v19 = vpop.eup %4290  ;;  %4296 = vrcp.f32 %v2168_v16 }
 0x3b4   : > { %v2285_v3 = vpop.f32.mrb[66].mxu0 }
 0x3b5   : > { %v5415_v47 = vmul.f32 %v4267_v27, %v2285_v3  ;;  %v2287_v38 = vpop.f32.mrb[67].mxu0  ;;  %v2171_v3 = vpop.xlane.xlu1 %2170 }
 0x3b6   : > { %v4293_v38 = vpop.eup %4292  ;;  %4298 = vrcp.f32 %v2171_v3 }
 0x3b7   : > { %v4295_v53 = vpop.eup %4294 }
 0x3b8   : > { %v2290_v57 = vpop.f32.mrb[68].mxu0 }
 0x3b9   : > { %v5417_v2 = vmul.f32 %v4269_v50, %v2290_v57  ;;  %v2292_v52 = vpop.f32.mrb[69].mxu0  ;;  %v2177_v20 = vpop.xlane.xlu1 %2176 }
 0x3ba   : > { %v2174_v52 = vpop.xlane.xlu0 %2173 }
 0x3bb   : > { %4300 = vrcp.f32 %v2174_v52 }
 0x3bc   : > { %v2295_v54 = vpop.f32.mrb[70].mxu0  ;;  %4302 = vrcp.f32 %v2177_v20 }
 0x3bd   : > { %v5419_v58 = vmul.f32 %v4271_v30, %v2295_v54  ;;  %v2297_v0 = vpop.f32.mrb[71].mxu0 }
 0x3c0   : > { %v2300_v17 = vpop.f32.mrb[72].mxu0 }
 0x3c1   : > { %v5421_v23 = vmul.f32 %v4273_v12, %v2300_v17  ;;  %v2302_v60 = vpop.f32.mrb[73].mxu0  ;;  %v4297_v12 = vpop.eup %4296 }
 0x3c4   : > { %v2305_v61 = vpop.f32.mrb[74].mxu0 }
 0x3c5   : > { %v5423_v55 = vmul.f32 %v4275_v28, %v2305_v61  ;;  %v2307_v32 = vpop.f32.mrb[75].mxu0  ;;  %v2180_v28 = vpop.xlane.xlu0 %2179 }
 0x3c6   : > { %v4299_v61 = vpop.eup %4298  ;;  %4304 = vrcp.f32 %v2180_v28 }
 0x3c8   : > { %v2310_v1 = vpop.f32.mrb[76].mxu0 }
 0x3c9   : > { %v5425_v5 = vmul.f32 %v4277_v15, %v2310_v1  ;;  %v2312_v59 = vpop.f32.mrb[77].mxu0  ;;  %v2183_v1 = vpop.xlane.xlu1 %2182 }
 0x3ca   : > { %v4301_v59 = vpop.eup %4300  ;;  %4306 = vrcp.f32 %v2183_v1 }
 0x3cb   : > { %v4303_v25 = vpop.eup %4302 }
 0x3cc   : > { %v2315_v9 = vpop.f32.mrb[78].mxu0 }
 0x3cd   : > { %v5427_v31 = vmul.f32 %v4279_v8, %v2315_v9  ;;  %v2317_v37 = vpop.f32.mrb[79].mxu0  ;;  %v2189_v33 = vpop.xlane.xlu1 %2188 }
 0x3ce   : > { %v2186_v37 = vpop.xlane.xlu0 %2185 }
 0x3cf   : > { %4308 = vrcp.f32 %v2186_v37 }
 0x3d0   : > { %v2320_v26 = vpop.f32.mrb[80].mxu0  ;;  %4310 = vrcp.f32 %v2189_v33 }
 0x3d1   : > { %v5429_v35 = vmul.f32 %v4281_v24, %v2320_v26  ;;  %v2322_v36 = vpop.f32.mrb[81].mxu0 }
 0x3d4   : > { %v2325_v18 = vpop.f32.mrb[82].mxu0 }
 0x3d5   : > { %v5431_v51 = vmul.f32 %v4283_v14, %v2325_v18  ;;  %v2327_v42 = vpop.f32.mrb[83].mxu0  ;;  %v4305_v14 = vpop.eup %4304 }
 0x3d8   : > { %v2330_v62 = vpop.f32.mrb[84].mxu0 }
 0x3d9   : > { %v5433_v49 = vmul.f32 %v4285_v29, %v2330_v62  ;;  %v2332_v11 = vpop.f32.mrb[85].mxu0  ;;  %v2192_v29 = vpop.xlane.xlu0 %2191 }
 0x3da   : > { %v4307_v62 = vpop.eup %4306  ;;  %4312 = vrcp.f32 %v2192_v29 }
 0x3dc   : > { %v2335_v6 = vpop.f32.mrb[86].mxu0 }
 0x3dd   : > { %v5435_v7 = vmul.f32 %v4287_v40, %v2335_v6  ;;  %v2337_v41 = vpop.f32.mrb[87].mxu0  ;;  %v2195_v6 = vpop.xlane.xlu1 %2194 }
 0x3de   : > { %v4309_v41 = vpop.eup %4308  ;;  %4314 = vrcp.f32 %v2195_v6 }
 0x3df   : > { %v4311_v16 = vpop.eup %4310 }
 0x3e0   : > { %v2340_v21 = vpop.f32.mrb[88].mxu0 }
 0x3e1   : > { %v5437_v10 = vmul.f32 %v4289_v43, %v2340_v21  ;;  %v2342_v22 = vpop.f32.mrb[89].mxu0  ;;  %v2201_v3 = vpop.xlane.xlu1 %2200 }
 0x3e2   : > { %v2198_v22 = vpop.xlane.xlu0 %2197 }
 0x3e3   : > { %4316 = vrcp.f32 %v2198_v22 }
 0x3e4   : > { %v2345_v45 = vpop.f32.mrb[90].mxu0  ;;  %4318 = vrcp.f32 %v2201_v3 }
 0x3e5   : > { %v5439_v48 = vmul.f32 %v4291_v19, %v2345_v45  ;;  %v2347_v27 = vpop.f32.mrb[91].mxu0 }
 0x3e8   : > { %v2350_v46 = vpop.f32.mrb[92].mxu0 }
 0x3e9   : > { %v5441_v50 = vmul.f32 %v4293_v38, %v2350_v46  ;;  %v2352_v57 = vpop.f32.mrb[93].mxu0  ;;  %v4313_v38 = vpop.eup %4312 }
 0x3ec   : > { %v2355_v30 = vpop.f32.mrb[94].mxu0 }
 0x3ed   : > { %v5443_v54 = vmul.f32 %v4295_v53, %v2355_v30  ;;  %v2357_v0 = vpop.f32.mrb[95].mxu0  ;;  %v2204_v53 = vpop.xlane.xlu0 %2203 }
 0x3ee   : > { %v4315_v30 = vpop.eup %4314  ;;  %4320 = vrcp.f32 %v2204_v53 }
 0x3f0   : > { %v2360_v17 = vpop.f32.mrb[96].mxu0 }
 0x3f1   : > { %v5445_v60 = vmul.f32 %v4297_v12, %v2360_v17  ;;  %v2362_v4 = vpop.f32.mrb[97].mxu0  ;;  %v2207_v17 = vpop.xlane.xlu1 %2206 }
 0x3f2   : > { %v4317_v4 = vpop.eup %4316  ;;  %4322 = vrcp.f32 %v2207_v17 }
 0x3f3   : > { %v4319_v1 = vpop.eup %4318 }
 0x3f4   : > { %v2365_v32 = vpop.f32.mrb[98].mxu0 }
 0x3f5   : > { %v5447_v34 = vmul.f32 %v4299_v61, %v2365_v32  ;;  %v2367_v15 = vpop.f32.mrb[99].mxu0  ;;  %v2213_v37 = vpop.xlane.xlu1 %2212 }
 0x3f6   : > { %v2210_v15 = vpop.xlane.xlu0 %2209 }
 0x3f7   : > { %4324 = vrcp.f32 %v2210_v15 }
 0x3f8   : > { %v2370_v13 = vpop.f32.mrb[100].mxu0  ;;  %4326 = vrcp.f32 %v2213_v37 }
 0x3f9   : > { %v5449_v8 = vmul.f32 %v4301_v59, %v2370_v13  ;;  %v2372_v9 = vpop.f32.mrb[101].mxu0 }
 0x3fc   : > { %v2375_v24 = vpop.f32.mrb[102].mxu0 }
 0x3fd   : > { %v5451_v26 = vmul.f32 %v4303_v25, %v2375_v24  ;;  %v2377_v36 = vpop.f32.mrb[103].mxu0  ;;  %v4321_v25 = vpop.eup %4320 }
 0x400   : > { %v2380_v18 = vpop.f32.mrb[104].mxu0 }
 0x401   : > { %v5453_v42 = vmul.f32 %v4305_v14, %v2380_v18  ;;  %v2382_v44 = vpop.f32.mrb[105].mxu0  ;;  %v4323_v14 = vpop.eup %4322 }
 0x404   : > { %v2385_v11 = vpop.f32.mrb[106].mxu0 }
 0x405   : > { %v5455_v63 = vmul.f32 %v4307_v62, %v2385_v11  ;;  %v2387_v40 = vpop.f32.mrb[107].mxu0  ;;  %v4325_v62 = vpop.eup %4324 }
 0x408   : > { %v2390_v39 = vpop.f32.mrb[108].mxu0 }
 0x409   : > { %v5457_v43 = vmul.f32 %v4309_v41, %v2390_v39  ;;  %v2392_v21 = vpop.f32.mrb[109].mxu0  ;;  %v4327_v41 = vpop.eup %4326 }
 0x40c   : > { %v2395_v19 = vpop.f32.mrb[110].mxu0 }
 0x40d   : > { %v5459_v45 = vmul.f32 %v4311_v16, %v2395_v19  ;;  %v2397_v27 = vpop.f32.mrb[111].mxu0  ;;  %v4425_v16 = vmov (!%p3363_p0), 0.0  }
 0x40e   : > { %2507 = vst.msk [vmem:[#allocation2] sm:$0xff] (!%p3363_p0), %vm480_vm0, %v4425_v16  ;;  %2508 = vst.msk [vmem:[#allocation2 + $0x8] sm:$0xff] (!%p3363_p0), %vm480_vm0, %v4425_v16 }
 0x40f   : > { %2509 = vst.msk [vmem:[#allocation2 + $0x10] sm:$0xff] (!%p3363_p0), %vm480_vm0, %v4425_v16  ;;  %2510 = vst.msk [vmem:[#allocation2 + $0x18] sm:$0xff] (!%p3363_p0), %vm480_vm0, %v4425_v16 }
 0x410   : > { %v2400_v46 = vpop.f32.mrb[112].mxu0  ;;  %2511 = vst.msk [vmem:[#allocation2 + $0x20] sm:$0xff] (!%p3363_p0), %vm480_vm0, %v4425_v16  ;;  %2512 = vst.msk [vmem:[#allocation2 + $0x28] sm:$0xff] (!%p3363_p0), %vm480_vm0, %v4425_v16 }
 0x411   : > { %v5461_v57 = vmul.f32 %v4313_v38, %v2400_v46  ;;  %v2402_v52 = vpop.f32.mrb[113].mxu0  ;;  %2513 = vst.msk [vmem:[#allocation2 + $0x30] sm:$0xff] (!%p3363_p0), %vm480_vm0, %v4425_v16  ;;  %2514 = vst.msk [vmem:[#allocation2 + $0x38] sm:$0xff] (!%p3363_p0), %vm480_vm0, %v4425_v16 }
 0x412   : > { %2515 = vst.msk [vmem:[#allocation2 + $0x40] sm:$0xff] (!%p3363_p0), %vm480_vm0, %v4425_v16  ;;  %2516 = vst.msk [vmem:[#allocation2 + $0x48] sm:$0xff] (!%p3363_p0), %vm480_vm0, %v4425_v16 }
 0x413   : > { %2517 = vst.msk [vmem:[#allocation2 + $0x50] sm:$0xff] (!%p3363_p0), %vm480_vm0, %v4425_v16  ;;  %2518 = vst.msk [vmem:[#allocation2 + $0x58] sm:$0xff] (!%p3363_p0), %vm480_vm0, %v4425_v16 }
 0x414   : > { %v2405_v0 = vpop.f32.mrb[114].mxu0  ;;  %2519 = vst.msk [vmem:[#allocation2 + $0x60] sm:$0xff] (!%p3363_p0), %vm480_vm0, %v4425_v16  ;;  %2520 = vst.msk [vmem:[#allocation2 + $0x68] sm:$0xff] (!%p3363_p0), %vm480_vm0, %v4425_v16 }
 0x415   : > { %v5463_v20 = vmul.f32 %v4315_v30, %v2405_v0  ;;  %v2407_v12 = vpop.f32.mrb[115].mxu0  ;;  %2521 = vst.msk [vmem:[#allocation2 + $0x70] sm:$0xff] (!%p3363_p0), %vm480_vm0, %v4425_v16  ;;  %2522 = vst.msk [vmem:[#allocation2 + $0x78] sm:$0xff] (!%p3363_p0), %vm480_vm0, %v4425_v16 }
 0x416   : > { %2523 = vst.msk [vmem:[#allocation2 + $0x80] sm:$0xff] (!%p3363_p0), %vm480_vm0, %v4425_v16  ;;  %2524 = vst.msk [vmem:[#allocation2 + $0x88] sm:$0xff] (!%p3363_p0), %vm480_vm0, %v4425_v16 }
 0x417   : > { %2525 = vst.msk [vmem:[#allocation2 + $0x90] sm:$0xff] (!%p3363_p0), %vm480_vm0, %v4425_v16  ;;  %2526 = vst.msk [vmem:[#allocation2 + $0x98] sm:$0xff] (!%p3363_p0), %vm480_vm0, %v4425_v16 }
 0x418   : > { %v2410_v28 = vpop.f32.mrb[116].mxu0  ;;  %2527 = vst.msk [vmem:[#allocation2 + $0xa0] sm:$0xff] (!%p3363_p0), %vm480_vm0, %v4425_v16  ;;  %2528 = vst.msk [vmem:[#allocation2 + $0xa8] sm:$0xff] (!%p3363_p0), %vm480_vm0, %v4425_v16 }
 0x419   : > { %v5465_v61 = vmul.f32 %v4317_v4, %v2410_v28  ;;  %v2412_v32 = vpop.f32.mrb[117].mxu0  ;;  %2529 = vst.msk [vmem:[#allocation2 + $0xb0] sm:$0xff] (!%p3363_p0), %vm480_vm0, %v4425_v16  ;;  %2530 = vst.msk [vmem:[#allocation2 + $0xb8] sm:$0xff] (!%p3363_p0), %vm480_vm0, %v4425_v16 }
 0x41a   : > { %2531 = vst.msk [vmem:[#allocation2 + $0xc0] sm:$0xff] (!%p3363_p0), %vm480_vm0, %v4425_v16  ;;  %2532 = vst.msk [vmem:[#allocation2 + $0xc8] sm:$0xff] (!%p3363_p0), %vm480_vm0, %v4425_v16 }
 0x41b   : > { %2533 = vst.msk [vmem:[#allocation2 + $0xd0] sm:$0xff] (!%p3363_p0), %vm480_vm0, %v4425_v16  ;;  %2534 = vst.msk [vmem:[#allocation2 + $0xd8] sm:$0xff] (!%p3363_p0), %vm480_vm0, %v4425_v16 }
 0x41c   : > { %v2415_v59 = vpop.f32.mrb[118].mxu0  ;;  %2535 = vst.msk [vmem:[#allocation2 + $0xe0] sm:$0xff] (!%p3363_p0), %vm480_vm0, %v4425_v16  ;;  %2536 = vst.msk [vmem:[#allocation2 + $0xe8] sm:$0xff] (!%p3363_p0), %vm480_vm0, %v4425_v16 }
 0x41d   : > { %v5467_v13 = vmul.f32 %v4319_v1, %v2415_v59  ;;  %v2417_v9 = vpop.f32.mrb[119].mxu0  ;;  %2537 = vst.msk [vmem:[#allocation2 + $0xf0] sm:$0xff] (!%p3363_p0), %vm480_vm0, %v4425_v16  ;;  %2538 = vst.msk [vmem:[#allocation2 + $0xf8] sm:$0xff] (!%p3363_p0), %vm480_vm0, %v4425_v16 }
 0x420   : > { %v2420_v24 = vpop.f32.mrb[120].mxu0 }
 0x421   : > { %v5469_v36 = vmul.f32 %v4321_v25, %v2420_v24  ;;  %v2422_v33 = vpop.f32.mrb[121].mxu0 }
 0x424   : > { %v2425_v18 = vpop.f32.mrb[122].mxu0 }
 0x425   : > { %v5471_v44 = vmul.f32 %v4323_v14, %v2425_v18  ;;  %v2427_v29 = vpop.f32.mrb[123].mxu0 }
 0x427   : > { %2506 = sbr.rel (%p3363_p0) target bundleno = 1070 (0x42e), region = 48 }
 0x428   : > { %v2430_v11 = vpop.f32.mrb[124].mxu0 }
 0x429   : > { %v5473_v40 = vmul.f32 %v4325_v62, %v2430_v11  ;;  %v2432_v6 = vpop.f32.mrb[125].mxu0 }
 0x42c   : > { %v2435_v39 = vpop.f32.mrb[126].mxu0 }
 0x42d   : > { %v5475_v21 = vmul.f32 %v4327_v41, %v2435_v39  ;;  %v2437_v22 = vpop.f32.mrb[127].mxu0 }
 0x42e PF: > { %v5828_v19 = vld [vmem:[#allocation8_spill] sm:$0xff]  ;;  %v5829_v27 = vld [vmem:[#allocation9_spill] sm:$0xff]  ;;  %v5830_v38 = vld [vmem:[#allocation10_spill] sm:$0xff]  ;;  %3861 = vmatprep.mubr.msk.f32.mxu1 %vm1380_vm1, %v5413_v56  ;;  %p3396_p1 = scmp.ne.s32.totalorder %s4406_s24, 1 }
 0x42f   : > { %v4053_v3 = vpack.c.bf16 %v5829_v27, %v5828_v19  ;;  %v5831_v46 = vld [vmem:[#allocation11_spill] sm:$0xff]  ;;  %v2540_v56 = vld [vmem:[#allocation2 + $0x8] sm:$0xff]  ;;  %v2547_v53 = vld [vmem:[#allocation2 + $0x40] sm:$0xff] }
 0x430   : > { %v4057_v52 = vpack.c.bf16 %v5831_v46, %v5830_v38  ;;  %v2550_v17 = vld [vmem:[#allocation2 + $0x58] sm:$0xff]  ;;  %v2549_v4 = vld [vmem:[#allocation2 + $0x50] sm:$0xff]  ;;  %v2552_v1 = vld [vmem:[#allocation2 + $0x68] sm:$0xff] }
 0x431   : > { %4054 = vmatprep.subr.bf16.mxu1 %v4053_v3  ;;  %v2551_v59 = vld [vmem:[#allocation2 + $0x60] sm:$0xff]  ;;  %v2554_v24 = vld [vmem:[#allocation2 + $0x78] sm:$0xff]  ;;  %v2556_v29 = vld [vmem:[#allocation2 + $0x88] sm:$0xff] }
 0x432   : > { %4056 = vmatpush3.bf16.msra.mxu1 %v4053_v3  ;;  %v2555_v62 = vld [vmem:[#allocation2 + $0x80] sm:$0xff]  ;;  %v2558_v39 = vld [vmem:[#allocation2 + $0x98] sm:$0xff]  ;;  %v2560_v3 = vld [vmem:[#allocation2 + $0xa8] sm:$0xff] }
 0x433   : > { %4058 = vmatprep.subr.bf16.mxu1 %v4057_v52  ;;  %v2559_v38 = vld [vmem:[#allocation2 + $0xa0] sm:$0xff] }
 0x436   : > { %4060 = vmatpush3.bf16.msra.mxu1 %v4057_v52 }
 0x439   : > { %3862 = vmatmul.mubr.msk.f32.vlgmr.msra.gmra.mrb[96].mxu1 %vm1380_vm1, %v5415_v47  ;;  %v2539_v47 = vld [vmem:[#allocation2] sm:$0xff] }
 0x43a   : > { %3864 = vmatprep.mubr.msk.f32.mxu1 %vm1380_vm1, %v5417_v2 }
 0x43d   : > { %3865 = vmatmul.mubr.msk.f32.gmra.mrb[98].mxu1 %vm1380_vm1, %v5419_v58 }
 0x43e   : > { %3867 = vmatprep.mubr.msk.f32.mxu1 %vm1380_vm1, %v5421_v23 }
 0x441   : > { %3868 = vmatmul.mubr.msk.f32.gmra.mrb[100].mxu1 %vm1380_vm1, %v5423_v55 }
 0x442   : > { %3870 = vmatprep.mubr.msk.f32.mxu1 %vm1380_vm1, %v5425_v5  ;;  %v2542_v5 = vld [vmem:[#allocation2 + $0x18] sm:$0xff] }
 0x445   : > { %3871 = vmatmul.mubr.msk.f32.gmra.mrb[102].mxu1 %vm1380_vm1, %v5427_v31  ;;  %v2541_v31 = vld [vmem:[#allocation2 + $0x10] sm:$0xff] }
 0x446   : > { %3873 = vmatprep.mubr.msk.f32.mxu1 %vm1380_vm1, %v5429_v35 }
 0x449   : > { %3874 = vmatmul.mubr.msk.f32.gmra.mrb[104].mxu1 %vm1380_vm1, %v5431_v51 }
 0x44a   : > { %3876 = vmatprep.mubr.msk.f32.mxu1 %vm1380_vm1, %v5433_v49 }
 0x44d   : > { %3877 = vmatmul.mubr.msk.f32.gmra.mrb[106].mxu1 %vm1380_vm1, %v5435_v7 }
 0x44e   : > { %3879 = vmatprep.mubr.msk.f32.mxu1 %vm1380_vm1, %v5437_v10  ;;  %v2544_v10 = vld [vmem:[#allocation2 + $0x28] sm:$0xff] }
 0x451   : > { %3880 = vmatmul.mubr.msk.f32.gmra.mrb[108].mxu1 %vm1380_vm1, %v5439_v48  ;;  %v2543_v48 = vld [vmem:[#allocation2 + $0x20] sm:$0xff] }
 0x452   : > { %3882 = vmatprep.mubr.msk.f32.mxu1 %vm1380_vm1, %v5441_v50 }
 0x455   : > { %3883 = vmatmul.mubr.msk.f32.gmra.mrb[110].mxu1 %vm1380_vm1, %v5443_v54 }
 0x456   : > { %3885 = vmatprep.mubr.msk.f32.mxu1 %vm1380_vm1, %v5445_v60 }
 0x459   : > { %3886 = vmatmul.mubr.msk.f32.gmra.mrb[112].mxu1 %vm1380_vm1, %v5447_v34 }
 0x45a   : > { %3888 = vmatprep.mubr.msk.f32.mxu1 %vm1380_vm1, %v5449_v8  ;;  %v2546_v8 = vld [vmem:[#allocation2 + $0x38] sm:$0xff] }
 0x45d   : > { %3889 = vmatmul.mubr.msk.f32.gmra.mrb[114].mxu1 %vm1380_vm1, %v5451_v26  ;;  %v2545_v26 = vld [vmem:[#allocation2 + $0x30] sm:$0xff] }
 0x45e   : > { %3891 = vmatprep.mubr.msk.f32.mxu1 %vm1380_vm1, %v5453_v42 }
 0x461   : > { %3892 = vmatmul.mubr.msk.f32.gmra.mrb[116].mxu1 %vm1380_vm1, %v5455_v63 }
 0x462   : > { %3894 = vmatprep.mubr.msk.f32.mxu1 %vm1380_vm1, %v5457_v43 }
 0x465   : > { %3895 = vmatmul.mubr.msk.f32.gmra.mrb[118].mxu1 %vm1380_vm1, %v5459_v45 }
 0x466   : > { %3897 = vmatprep.mubr.msk.f32.mxu1 %vm1380_vm1, %v5461_v57  ;;  %v2548_v57 = vld [vmem:[#allocation2 + $0x48] sm:$0xff] }
 0x469   : > { %3898 = vmatmul.mubr.msk.f32.gmra.mrb[120].mxu1 %vm1380_vm1, %v5463_v20 }
 0x46a   : > { %3900 = vmatprep.mubr.msk.f32.mxu1 %vm1380_vm1, %v5465_v61 }
 0x46d   : > { %3901 = vmatmul.mubr.msk.f32.gmra.mrb[122].mxu1 %vm1380_vm1, %v5467_v13 }
 0x46e   : > { %3903 = vmatprep.mubr.msk.f32.mxu1 %vm1380_vm1, %v5469_v36  ;;  %v2553_v36 = vld [vmem:[#allocation2 + $0x70] sm:$0xff] }
 0x471   : > { %3904 = vmatmul.mubr.msk.f32.gmra.mrb[124].mxu1 %vm1380_vm1, %v5471_v44 }
 0x472   : > { %3906 = vmatprep.mubr.msk.f32.mxu1 %vm1380_vm1, %v5473_v40 }
 0x475   : > { %3907 = vmatmul.mubr.msk.f32.gmra.mrb[126].mxu1 %vm1380_vm1, %v5475_v21  ;;  %v2557_v21 = vld [vmem:[#allocation2 + $0x90] sm:$0xff] }
 0x50c   : > { %v3863_v2 = vpop.f32.mrb[96].mxu1 }
 0x50d   : > { %v2893_v58 = vadd.f32 %v3863_v2, %v2540_v56  ;;  %v2733_v23 = vpop.f32.mrb[97].mxu1  ;;  %v2562_v2 = vld [vmem:[#allocation2 + $0xb8] sm:$0xff] }
 0x50e   : > { %v2892_v55 = vadd.f32 %v2733_v23, %v2539_v47 }
 0x50f   : > { %2925 = vst.msk [vmem:[#allocation2 + $0x8] sm:$0xff] %vm480_vm0, %v2893_v58  ;;  %v2561_v58 = vld [vmem:[#allocation2 + $0xb0] sm:$0xff] }
 0x510   : > { %2924 = vst.msk [vmem:[#allocation2] sm:$0xff] %vm480_vm0, %v2892_v55  ;;  %v3866_v35 = vpop.f32.mrb[98].mxu1 }
 0x511   : > { %v2895_v51 = vadd.f32 %v3866_v35, %v2542_v5  ;;  %v2743_v49 = vpop.f32.mrb[99].mxu1  ;;  %v2564_v35 = vld [vmem:[#allocation2 + $0xc8] sm:$0xff] }
 0x512   : > { %v2894_v7 = vadd.f32 %v2743_v49, %v2541_v31 }
 0x513   : > { %2927 = vst.msk [vmem:[#allocation2 + $0x18] sm:$0xff] %vm480_vm0, %v2895_v51  ;;  %v2563_v51 = vld [vmem:[#allocation2 + $0xc0] sm:$0xff] }
 0x514   : > { %2926 = vst.msk [vmem:[#allocation2 + $0x10] sm:$0xff] %vm480_vm0, %v2894_v7  ;;  %v3869_v50 = vpop.f32.mrb[100].mxu1 }
 0x515   : > { %v2897_v54 = vadd.f32 %v3869_v50, %v2544_v10  ;;  %v2753_v60 = vpop.f32.mrb[101].mxu1  ;;  %v2566_v50 = vld [vmem:[#allocation2 + $0xd8] sm:$0xff] }
 0x516   : > { %v2896_v34 = vadd.f32 %v2753_v60, %v2543_v48 }
 0x517   : > { %2929 = vst.msk [vmem:[#allocation2 + $0x28] sm:$0xff] %vm480_vm0, %v2897_v54  ;;  %v2565_v54 = vld [vmem:[#allocation2 + $0xd0] sm:$0xff] }
 0x518   : > { %2928 = vst.msk [vmem:[#allocation2 + $0x20] sm:$0xff] %vm480_vm0, %v2896_v34  ;;  %v3872_v42 = vpop.f32.mrb[102].mxu1 }
 0x519   : > { %v2899_v63 = vadd.f32 %v3872_v42, %v2546_v8  ;;  %v2763_v43 = vpop.f32.mrb[103].mxu1  ;;  %v2568_v42 = vld [vmem:[#allocation2 + $0xe8] sm:$0xff] }
 0x51a   : > { %v2898_v45 = vadd.f32 %v2763_v43, %v2545_v26 }
 0x51b   : > { %2931 = vst.msk [vmem:[#allocation2 + $0x38] sm:$0xff] %vm480_vm0, %v2899_v63  ;;  %v2567_v63 = vld [vmem:[#allocation2 + $0xe0] sm:$0xff] }
 0x51c   : > { %2930 = vst.msk [vmem:[#allocation2 + $0x30] sm:$0xff] %vm480_vm0, %v2898_v45  ;;  %v3875_v30 = vpop.f32.mrb[104].mxu1 }
 0x51d   : > { %v2901_v0 = vadd.f32 %v3875_v30, %v2548_v57  ;;  %v2773_v20 = vpop.f32.mrb[105].mxu1  ;;  %v2570_v30 = vld [vmem:[#allocation2 + $0xf8] sm:$0xff] }
 0x51e   : > { %v2900_v12 = vadd.f32 %v2773_v20, %v2547_v53 }
 0x51f   : > { %2933 = vst.msk [vmem:[#allocation2 + $0x48] sm:$0xff] %vm480_vm0, %v2901_v0  ;;  %v2569_v0 = vld [vmem:[#allocation2 + $0xf0] sm:$0xff] }
 0x520   : > { %2932 = vst.msk [vmem:[#allocation2 + $0x40] sm:$0xff] %vm480_vm0, %v2900_v12  ;;  %v3878_v28 = vpop.f32.mrb[106].mxu1 }
 0x521   : > { %v2903_v61 = vadd.f32 %v3878_v28, %v2550_v17  ;;  %v2783_v32 = vpop.f32.mrb[107].mxu1  ;;  %v2960_v28 = vld [vmem:[#allocation2] sm:$0xff] (!%p3396_p1) }
 0x522   : > { %v2902_v15 = vadd.f32 %v2783_v32, %v2549_v4  ;;  %v2962_v32 = vld [vmem:[#allocation2 + $0x10] sm:$0xff] (!%p3396_p1)  ;;  %2992 = vst.msk [vmem:[%s5478_s17] sm:$0xff] (!%p3396_p1), %vm480_vm0, %v2960_v28 }
 0x523   : > { %2935 = vst.msk [vmem:[#allocation2 + $0x58] sm:$0xff] %vm480_vm0, %v2903_v61  ;;  %v2961_v61 = vld [vmem:[#allocation2 + $0x8] sm:$0xff] (!%p3396_p1)  ;;  %2994 = vst.msk [vmem:[%s5478_s17 + $0x10] sm:$0xff] (!%p3396_p1), %vm480_vm0, %v2962_v32 }
 0x524   : > { %2934 = vst.msk [vmem:[#allocation2 + $0x50] sm:$0xff] %vm480_vm0, %v2902_v15  ;;  %v3881_v13 = vpop.f32.mrb[108].mxu1  ;;  %2993 = vst.msk [vmem:[%s5478_s17 + $0x8] sm:$0xff] (!%p3396_p1), %vm480_vm0, %v2961_v61  ;;  %v2963_v15 = vld [vmem:[#allocation2 + $0x18] sm:$0xff] (!%p3396_p1) }
 0x525   : > { %v2905_v9 = vadd.f32 %v3881_v13, %v2552_v1  ;;  %v2793_v37 = vpop.f32.mrb[109].mxu1  ;;  %v2964_v1 = vld [vmem:[#allocation2 + $0x20] sm:$0xff] (!%p3396_p1)  ;;  %2995 = vst.msk [vmem:[%s5478_s17 + $0x18] sm:$0xff] (!%p3396_p1), %vm480_vm0, %v2963_v15  ;;  %v2966_v13 = vld [vmem:[#allocation2 + $0x30] sm:$0xff] (!%p3396_p1) }
 0x526   : > { %v2904_v25 = vadd.f32 %v2793_v37, %v2551_v59  ;;  %v2965_v59 = vld [vmem:[#allocation2 + $0x28] sm:$0xff] (!%p3396_p1)  ;;  %2996 = vst.msk [vmem:[%s5478_s17 + $0x20] sm:$0xff] (!%p3396_p1), %vm480_vm0, %v2964_v1  ;;  %2998 = vst.msk [vmem:[%s5478_s17 + $0x30] sm:$0xff] (!%p3396_p1), %vm480_vm0, %v2966_v13 }
 0x527   : > { %2937 = vst.msk [vmem:[#allocation2 + $0x68] sm:$0xff] %vm480_vm0, %v2905_v9  ;;  %2997 = vst.msk [vmem:[%s5478_s17 + $0x28] sm:$0xff] (!%p3396_p1), %vm480_vm0, %v2965_v59  ;;  %v2967_v9 = vld [vmem:[#allocation2 + $0x38] sm:$0xff] (!%p3396_p1)  ;;  %v2968_v37 = vld [vmem:[#allocation2 + $0x40] sm:$0xff] (!%p3396_p1) }
 0x528   : > { %2936 = vst.msk [vmem:[#allocation2 + $0x60] sm:$0xff] %vm480_vm0, %v2904_v25  ;;  %v3884_v33 = vpop.f32.mrb[110].mxu1  ;;  %2999 = vst.msk [vmem:[%s5478_s17 + $0x38] sm:$0xff] (!%p3396_p1), %vm480_vm0, %v2967_v9  ;;  %v2969_v25 = vld [vmem:[#allocation2 + $0x48] sm:$0xff] (!%p3396_p1) }
 0x529   : > { %v2907_v14 = vadd.f32 %v3884_v33, %v2554_v24  ;;  %v2803_v18 = vpop.f32.mrb[111].mxu1  ;;  %3000 = vst.msk [vmem:[%s5478_s17 + $0x40] sm:$0xff] (!%p3396_p1), %vm480_vm0, %v2968_v37  ;;  %3001 = vst.msk [vmem:[%s5478_s17 + $0x48] sm:$0xff] (!%p3396_p1), %vm480_vm0, %v2969_v25 }
 0x52a   : > { %v2906_v44 = vadd.f32 %v2803_v18, %v2553_v36  ;;  %v2971_v36 = vld [vmem:[#allocation2 + $0x58] sm:$0xff] (!%p3396_p1) }
 0x52b   : > { %2939 = vst.msk [vmem:[#allocation2 + $0x78] sm:$0xff] %vm480_vm0, %v2907_v14  ;;  %v2970_v24 = vld [vmem:[#allocation2 + $0x50] sm:$0xff] (!%p3396_p1)  ;;  %3003 = vst.msk [vmem:[%s5478_s17 + $0x58] sm:$0xff] (!%p3396_p1), %vm480_vm0, %v2971_v36 }
 0x52c   : > { %2938 = vst.msk [vmem:[#allocation2 + $0x70] sm:$0xff] %vm480_vm0, %v2906_v44  ;;  %v3887_v11 = vpop.f32.mrb[112].mxu1  ;;  %3002 = vst.msk [vmem:[%s5478_s17 + $0x50] sm:$0xff] (!%p3396_p1), %vm480_vm0, %v2970_v24 }
 0x52d   : > { %v2909_v40 = vadd.f32 %v3887_v11, %v2556_v29  ;;  %v2813_v6 = vpop.f32.mrb[113].mxu1 }
 0x52e   : > { %v2908_v41 = vadd.f32 %v2813_v6, %v2555_v62  ;;  %v2973_v14 = vld [vmem:[#allocation2 + $0x68] sm:$0xff] (!%p3396_p1) }
 0x52f   : > { %2941 = vst.msk [vmem:[#allocation2 + $0x88] sm:$0xff] %vm480_vm0, %v2909_v40  ;;  %v2972_v33 = vld [vmem:[#allocation2 + $0x60] sm:$0xff] (!%p3396_p1)  ;;  %3005 = vst.msk [vmem:[%s5478_s17 + $0x68] sm:$0xff] (!%p3396_p1), %vm480_vm0, %v2973_v14 }
 0x530   : > { %2940 = vst.msk [vmem:[#allocation2 + $0x80] sm:$0xff] %vm480_vm0, %v2908_v41  ;;  %v3890_v22 = vpop.f32.mrb[114].mxu1  ;;  %3004 = vst.msk [vmem:[%s5478_s17 + $0x60] sm:$0xff] (!%p3396_p1), %vm480_vm0, %v2972_v33 }
 0x531   : > { %v2911_v16 = vadd.f32 %v3890_v22, %v2558_v39  ;;  %v2823_v19 = vpop.f32.mrb[115].mxu1 }
 0x532   : > { %v2910_v27 = vadd.f32 %v2823_v19, %v2557_v21  ;;  %v2975_v44 = vld [vmem:[#allocation2 + $0x78] sm:$0xff] (!%p3396_p1) }
 0x533   : > { %2943 = vst.msk [vmem:[#allocation2 + $0x98] sm:$0xff] %vm480_vm0, %v2911_v16  ;;  %v2974_v18 = vld [vmem:[#allocation2 + $0x70] sm:$0xff] (!%p3396_p1)  ;;  %3007 = vst.msk [vmem:[%s5478_s17 + $0x78] sm:$0xff] (!%p3396_p1), %vm480_vm0, %v2975_v44 }
 0x534   : > { %2942 = vst.msk [vmem:[#allocation2 + $0x90] sm:$0xff] %vm480_vm0, %v2910_v27  ;;  %v3893_v46 = vpop.f32.mrb[116].mxu1  ;;  %3006 = vst.msk [vmem:[%s5478_s17 + $0x70] sm:$0xff] (!%p3396_p1), %vm480_vm0, %v2974_v18 }
 0x535   : > { %v2913_v52 = vadd.f32 %v3893_v46, %v2560_v3  ;;  %v2833_v56 = vpop.f32.mrb[117].mxu1 }
 0x536   : > { %v2912_v47 = vadd.f32 %v2833_v56, %v2559_v38  ;;  %v2977_v62 = vld [vmem:[#allocation2 + $0x88] sm:$0xff] (!%p3396_p1) }
 0x537   : > { %2945 = vst.msk [vmem:[#allocation2 + $0xa8] sm:$0xff] %vm480_vm0, %v2913_v52  ;;  %v2976_v29 = vld [vmem:[#allocation2 + $0x80] sm:$0xff] (!%p3396_p1)  ;;  %3009 = vst.msk [vmem:[%s5478_s17 + $0x88] sm:$0xff] (!%p3396_p1), %vm480_vm0, %v2977_v62 }
 0x538   : > { %2944 = vst.msk [vmem:[#allocation2 + $0xa0] sm:$0xff] %vm480_vm0, %v2912_v47  ;;  %v3896_v23 = vpop.f32.mrb[118].mxu1  ;;  %3008 = vst.msk [vmem:[%s5478_s17 + $0x80] sm:$0xff] (!%p3396_p1), %vm480_vm0, %v2976_v29 }
 0x539   : > { %v2915_v55 = vadd.f32 %v3896_v23, %v2562_v2  ;;  %v2843_v5 = vpop.f32.mrb[119].mxu1 }
 0x53a   : > { %v2914_v31 = vadd.f32 %v2843_v5, %v2561_v58  ;;  %v2979_v40 = vld [vmem:[#allocation2 + $0x98] sm:$0xff] (!%p3396_p1) }
 0x53b   : > { %2947 = vst.msk [vmem:[#allocation2 + $0xb8] sm:$0xff] %vm480_vm0, %v2915_v55  ;;  %v2978_v11 = vld [vmem:[#allocation2 + $0x90] sm:$0xff] (!%p3396_p1)  ;;  %3011 = vst.msk [vmem:[%s5478_s17 + $0x98] sm:$0xff] (!%p3396_p1), %vm480_vm0, %v2979_v40 }
 0x53c   : > { %2946 = vst.msk [vmem:[#allocation2 + $0xb0] sm:$0xff] %vm480_vm0, %v2914_v31  ;;  %v3899_v49 = vpop.f32.mrb[120].mxu1  ;;  %3010 = vst.msk [vmem:[%s5478_s17 + $0x90] sm:$0xff] (!%p3396_p1), %vm480_vm0, %v2978_v11 }
 0x53d   : > { %v2917_v7 = vadd.f32 %v3899_v49, %v2564_v35  ;;  %v2853_v10 = vpop.f32.mrb[121].mxu1 }
 0x53e   : > { %v2916_v48 = vadd.f32 %v2853_v10, %v2563_v51  ;;  %v2981_v41 = vld [vmem:[#allocation2 + $0xa8] sm:$0xff] (!%p3396_p1) }
 0x53f   : > { %2949 = vst.msk [vmem:[#allocation2 + $0xc8] sm:$0xff] %vm480_vm0, %v2917_v7  ;;  %v2980_v6 = vld [vmem:[#allocation2 + $0xa0] sm:$0xff] (!%p3396_p1)  ;;  %3013 = vst.msk [vmem:[%s5478_s17 + $0xa8] sm:$0xff] (!%p3396_p1), %vm480_vm0, %v2981_v41 }
 0x540   : > { %2948 = vst.msk [vmem:[#allocation2 + $0xc0] sm:$0xff] %vm480_vm0, %v2916_v48  ;;  %v3902_v60 = vpop.f32.mrb[122].mxu1  ;;  %3012 = vst.msk [vmem:[%s5478_s17 + $0xa0] sm:$0xff] (!%p3396_p1), %vm480_vm0, %v2980_v6 }
 0x541   : > { %v2919_v34 = vadd.f32 %v3902_v60, %v2566_v50  ;;  %v2863_v8 = vpop.f32.mrb[123].mxu1 }
 0x542   : > { %v2918_v26 = vadd.f32 %v2863_v8, %v2565_v54  ;;  %v2983_v21 = vld [vmem:[#allocation2 + $0xb8] sm:$0xff] (!%p3396_p1) }
 0x543   : > { %2951 = vst.msk [vmem:[#allocation2 + $0xd8] sm:$0xff] %vm480_vm0, %v2919_v34  ;;  %v2982_v39 = vld [vmem:[#allocation2 + $0xb0] sm:$0xff] (!%p3396_p1)  ;;  %3015 = vst.msk [vmem:[%s5478_s17 + $0xb8] sm:$0xff] (!%p3396_p1), %vm480_vm0, %v2983_v21 }
 0x544   : > { %2950 = vst.msk [vmem:[#allocation2 + $0xd0] sm:$0xff] %vm480_vm0, %v2918_v26  ;;  %v3905_v43 = vpop.f32.mrb[124].mxu1  ;;  %3014 = vst.msk [vmem:[%s5478_s17 + $0xb0] sm:$0xff] (!%p3396_p1), %vm480_vm0, %v2982_v39 }
 0x545   : > { %v2921_v45 = vadd.f32 %v3905_v43, %v2568_v42  ;;  %v2873_v57 = vpop.f32.mrb[125].mxu1 }
 0x546   : > { %v2920_v53 = vadd.f32 %v2873_v57, %v2567_v63  ;;  %2959 = sbr.rel (%p3396_p1) target bundleno = 1365 (0x555), region = 52  ;;  %v2985_v16 = vld [vmem:[#allocation2 + $0xc8] sm:$0xff] (!%p3396_p1) }
 0x547   : > { %2953 = vst.msk [vmem:[#allocation2 + $0xe8] sm:$0xff] %vm480_vm0, %v2921_v45  ;;  %v2984_v22 = vld [vmem:[#allocation2 + $0xc0] sm:$0xff] (!%p3396_p1)  ;;  %3017 = vst.msk [vmem:[%s5478_s17 + $0xc8] sm:$0xff] (!%p3396_p1), %vm480_vm0, %v2985_v16 }
 0x548   : > { %2952 = vst.msk [vmem:[#allocation2 + $0xe0] sm:$0xff] %vm480_vm0, %v2920_v53  ;;  %v3908_v20 = vpop.f32.mrb[126].mxu1  ;;  %3016 = vst.msk [vmem:[%s5478_s17 + $0xc0] sm:$0xff] (!%p3396_p1), %vm480_vm0, %v2984_v22 }
 0x549   : > { %v2923_v12 = vadd.f32 %v3908_v20, %v2570_v30  ;;  %v2883_v17 = vpop.f32.mrb[127].mxu1 }
 0x54a   : > { %v2922_v4 = vadd.f32 %v2883_v17, %v2569_v0  ;;  %v2987_v27 = vld [vmem:[#allocation2 + $0xd8] sm:$0xff] (!%p3396_p1) }
 0x54b   : > { %2955 = vst.msk [vmem:[#allocation2 + $0xf8] sm:$0xff] %vm480_vm0, %v2923_v12  ;;  %v2986_v19 = vld [vmem:[#allocation2 + $0xd0] sm:$0xff] (!%p3396_p1)  ;;  %3019 = vst.msk [vmem:[%s5478_s17 + $0xd8] sm:$0xff] (!%p3396_p1), %vm480_vm0, %v2987_v27 }
 0x54c   : > { %2954 = vst.msk [vmem:[#allocation2 + $0xf0] sm:$0xff] %vm480_vm0, %v2922_v4  ;;  %3018 = vst.msk [vmem:[%s5478_s17 + $0xd0] sm:$0xff] (!%p3396_p1), %vm480_vm0, %v2986_v19 }
 0x54e   : > { %v2989_v38 = vld [vmem:[#allocation2 + $0xe8] sm:$0xff] }
 0x54f   : > { %v2988_v3 = vld [vmem:[#allocation2 + $0xe0] sm:$0xff]  ;;  %3021 = vst.msk [vmem:[%s5478_s17 + $0xe8] sm:$0xff] %vm480_vm0, %v2989_v38 }
 0x550   : > { %3020 = vst.msk [vmem:[%s5478_s17 + $0xe0] sm:$0xff] %vm480_vm0, %v2988_v3 }
 0x552   : > { %v2991_v52 = vld [vmem:[#allocation2 + $0xf8] sm:$0xff] }
 0x553   : > { %v2990_v46 = vld [vmem:[#allocation2 + $0xf0] sm:$0xff]  ;;  %3023 = vst.msk [vmem:[%s5478_s17 + $0xf8] sm:$0xff] %vm480_vm0, %v2991_v52 }
 0x554   : > { %3022 = vst.msk [vmem:[%s5478_s17 + $0xf0] sm:$0xff] %vm480_vm0, %v2990_v46 }
 0x555 PF: > { %s3408_s24 = sshll.u32 %s4410_s25, 12  ;;  %s3040_s8 = sshll.u32 %s5478_s17, 4  ;;  %s5685_s8 = int_to_ptr.vmem [resolvable:$true] %s3040_s8 }
 0x556   : > { %s5682_s18 = scalar_lea.hbm %s5747_s6, %s3408_s24  ;;  %s5832_s20 = sand.u32 1, %s4398_s22  }
 0x557   : > { %s5689_s30 = scalar_lea.sflag [#allocation4], %s5832_s20  ;;  %s4328_s11 = scalar_lea.vmem %s5685_s8, 4096 }
 0x558   : > { %p4329_p2 = scmp.ne.s32.totalorder %s5685_s8, %s4328_s11  ;;  %s4426_s25 = smov [#allocation3]  }
 0x559   : > { %s4332_s12 = sshll.u32 %s4426_s25, 4  ;;  %s4333_s12 = int_to_ptr.vmem [resolvable:$false] %s4332_s12 }
 0x55a   : > { %p4330_p4 = pnand %p4329_p2, %p4513_p3  ;;  %s4334_s15 = scalar_lea.vmem %s4333_s12, 8192 }
 0x55b   : > { %p4335_p6 = scmp.lt.s32.totalorder %s5685_s8, %s4333_s12  ;;  %p4336_p7 = scmp.lt.s32.totalorder %s4334_s15, %s4328_s11 }
 0x55c   : > { %p4331_p5 = pneg %p4330_p4 }
 0x55d   : > { %p4337_p8 = por %p4336_p7, %p4335_p6 }
 0x55f   : > { %p4338_p10 = pnand %p4337_p8, %p4331_p5 }
 0x561   : > { %4341 = shalt.err (!%p4338_p10)
}
 0x562   : > { %s4342_s14 = scalar_lea.hbm %s5682_s18, 4096  ;;  %s4346_s17 = scalar_lea.hbm %s5747_s6, 8192 }
 0x563   : > { %p4343_p11 = scmp.ne.s32.totalorder %s5682_s18, %s4342_s14  ;;  %p4347_p0 = scmp.lt.u32.totalorder %s5682_s18, %s5747_s6 }
 0x564   : > { %p4348_p1 = scmp.lt.u32.totalorder %s4346_s17, %s4342_s14  ;;  %p4350_p4 = scmp.lt.u32.totalorder %s4342_s14, %s5682_s18 }
 0x565   : > { %p4344_p12 = pnand %p4343_p11, %p4513_p3 }
 0x566   : > { %p4349_p2 = por %p4348_p1, %p4347_p0 }
 0x567   : > { %p4345_p13 = pneg %p4344_p12 }
 0x568   : > { %p4351_p5 = por %p4350_p4, %p4349_p2 }
 0x56a   : > { %p4352_p6 = pnand %p4351_p5, %p4345_p13 }
 0x56c   : > { %4355 = shalt.err (!%p4352_p6)
}
 0x56d   : > { %s4427_s19 = smov 128   ;;  %s4428_s20 = smov 8  }
 0x56e   : > { %4061 = dma.vmem_to_hbm [thread:$0]  (%p4513_p3), %s5685_s8, 4096, %s5682_s18, %s5689_s30, %s4427_s19, %s4427_s19, %s4428_s20  }
 0x56f PF: > { %p4067_p7 = scmp.ge.s32.totalorder %s4422_s28, 2  ;;  %s3055_s11 = sand.u32 1, %s4394_s21  }
 0x570   : > { %s3056_s25 = scalar_lea.sflag [#allocation4], %s3055_s11 }
 0x571   : > { %p4064_p8 = pnand %p4067_p7, %p4523_p9 }
 0x573   : > { %4389 = dma.done.wait (!%p4064_p8), %s3056_s25, 4096  }
 0x574   : > { %4391 = vsyncadd (!%p4064_p8), %s3056_s25, 4294963200  ;;  %s19_s28 = sadd.s32 1, %s4422_s28   ;;  %s5833_s9 = sld [smem:[#allocation6_spill]] }
 0x575   : > { %p16_p10 = scmp.ge.s32.totalorder %s19_s28, 6   ;;  %s5834_s18 = sld [smem:[#allocation7_spill]] }
 0x576   : > { %s5835_s21 = smov %s4398_s22  ;;  %s5836_s22 = smov %s4402_s23 }
 0x577   : > { %s5837_s23 = smov %s4531_s13  ;;  %s5838_s24 = smov %s4414_s26 }
 0x578   : > { %s5839_s25 = smov %s4418_s27  ;;  %18 = sbr.rel (!%p16_p10) target bundleno = 5 (0x5), region = 102 }
 0x57a   : > { %s5840_s26 = smov %s5833_s9 }
 0x57b   : > { %s5841_s27 = smov %s5834_s18 }
 0x57f   :  { %3061 = vsyncpa [#allocation4], 1 }
 0x580   :  { %3063 = vsyncpa [#allocation4 + $0x1], 1 }

</bundles_post_ra>
